<compile_context>
chip_gen: v5e
topology: v5e:2x2
jax: 0.10.0
libtpu: 0.0.40
codegen_flags: <defaults>
</compile_context>

<pallas_src>
import functools

import jax
import jax.numpy as jnp
from jax.experimental import pallas as pl
from jax.experimental.pallas import tpu as pltpu


def bilstm_kernel(x_ref, h0_ref, c0_ref, wih_ref, whh_ref, b_ref,
                  wfc_ref, bfc_ref, out_ref, *, seq_len, hidden):
    """Whole-array kernel (no grid): LSTM recurrence + final Linear in VMEM.

    x_ref    : (B, T, D)     batch-major input (PyTorch transpose folded in here)
    h0_ref   : (2, B, D)     [0]=forward dir, [1]=reverse dir
    c0_ref   : (2, B, D)
    wih_ref  : (2, D, 4D)    input->gates weights, gate order [i|f|o|g]
    whh_ref  : (2, D, 4D)    hidden->gates weights, gate order [i|f|o|g]
    b_ref    : (2, 1, 4D)    combined bias (b_ih + b_hh), gate order [i|f|o|g]
    wfc_ref  : (2, D, D)     fc_bi weight split: [0]=forward half, [1]=backward half
    bfc_ref  : (1, D)        fc_bi bias
    out_ref  : (B, D)
    """
    T = seq_len
    D = hidden
    B = x_ref.shape[0]

    x = x_ref[...]                                   # (B, T, D), single VMEM load

    # Gate order along the packed 4D lane axis is [i | f | o | g] (host-side
    # column permutation of PyTorch's [i | f | g | o]) so the three sigmoid
    # gates are lane-contiguous.  Mask hoisted out of the loop.
    lane = jax.lax.broadcasted_iota(jnp.int32, (B, 4 * D), 1)
    sig_mask = lane < 3 * D

    def cell(pre, h, c, whh):
        # ONE fused (B, D) @ (D, 4D) recurrent matmul per step: with D=32 the
        # 4D = 128 gate axis exactly fills the lane dim -> one dense
        # pre-activation slab (one MXU push/pop on the serial chain).
        g = pre + jnp.dot(h, whh, preferred_element_type=jnp.float32)
        # One full-lane sigmoid + one full-lane tanh + select instead of four
        # quarter-lane activations (EUP has a single VLIW slot).
        act = jnp.where(sig_mask, jax.nn.sigmoid(g), jnp.tanh(g))
        i_t = act[:, 0 * D:1 * D]
        f_t = act[:, 1 * D:2 * D]
        o_t = act[:, 2 * D:3 * D]
        g_t = act[:, 3 * D:4 * D]
        c_new = f_t * c + i_t * g_t
        h_new = o_t * jnp.tanh(c_new)
        return h_new, c_new

    # ---- forward direction --------------------------------------------------
    # Hoisted input projection + bias: one (B*T, D) @ (D, 4D) MXU matmul, off
    # the serial path.  The PyTorch-side X.transpose(0, 1) is folded in here:
    # each step just takes a dense (B, 4D) slab from the packed projection.
    proj = (jnp.dot(x.reshape(B * T, D), wih_ref[0],
                    preferred_element_type=jnp.float32)
            + b_ref[0]).reshape(B, T, 4 * D)

    whh_fwd = whh_ref[0]
    h = h0_ref[0]
    c = c0_ref[0]
    # T is a small static trip count: fully unroll so all indexing is static
    # and the scheduler sees across steps.
    for t in range(T):
        h, c = cell(proj[:, t, :], h, c, whh_fwd)
    h_fwd = h

    # ---- reverse direction: outputs[-1]'s backward half is the reverse LSTM's
    # hidden after it has processed ONLY x[T-1] (its first step). -------------
    pre_r = (jnp.dot(x[:, T - 1, :], wih_ref[1],
                     preferred_element_type=jnp.float32) + b_ref[1])
    h_bwd, _ = cell(pre_r, h0_ref[1], c0_ref[1], whh_ref[1])

    # ---- fc_bi without the lane concat: split-weight sum --------------------
    out_ref[...] = (jnp.dot(h_fwd, wfc_ref[0], preferred_element_type=jnp.float32)
                    + jnp.dot(h_bwd, wfc_ref[1], preferred_element_type=jnp.float32)
                    + bfc_ref[...])


def bilstm_forward(X, hidden_state, cell_state, wih, whh, b, wfc, bfc):
    """X: (B, T, D), hidden_state/cell_state: (2, B, D). Returns (B, D).

    Params must be packed with pack_params (gate order [i|f|o|g]).  No wrapper
    transpose / pad: the kernel consumes X batch-major directly.
    """
    B, T, D = X.shape
    args = (X, hidden_state, cell_state, wih, whh, b, wfc, bfc)

    flops = (2 * B * T * D * 4 * D          # hoisted forward input projection
             + 2 * T * B * D * 4 * D        # forward recurrent matmuls
             + 2 * 2 * B * D * 4 * D        # reverse dir (projection + 1 step)
             + 2 * B * 2 * D * D)           # fc_bi
    # Per step: full-lane sigmoid + full-lane tanh over 4D + tanh(c) over D.
    transcendentals = (T + 1) * B * (4 * D + 4 * D + D)
    bytes_accessed = int(sum(a.size * a.dtype.itemsize for a in args)
                         + B * D * 4)

    vmem = pl.BlockSpec(memory_space=pltpu.MemorySpace.VMEM)
    return pl.pallas_call(
        functools.partial(bilstm_kernel, seq_len=T, hidden=D),
        out_shape=jax.ShapeDtypeStruct((B, D), jnp.float32),
        in_specs=[vmem] * len(args),
        out_specs=vmem,
        cost_estimate=pl.CostEstimate(flops=flops,
                                      transcendentals=transcendentals,
                                      bytes_accessed=bytes_accessed),
    )(*args)


def pack_params(w_ih, w_hh, b_ih, b_hh, w_fc, b_fc):
    """PyTorch-layout params -> kernel layout.

    w_ih, w_hh: (2, 4D, D) gate order [i|f|g|o];  b_ih, b_hh: (2, 4D)
    w_fc: (D, 2D);  b_fc: (D,)
    Returns: wih/whh (2, D, 4D) with gates reordered to [i|f|o|g] (sigmoid
    gates lane-contiguous), combined bias (2, 1, 4D), wfc (2, D, D) split into
    forward/backward halves, bfc (1, D).
    """
    D = w_fc.shape[0]
    perm = jnp.concatenate([jnp.arange(0, 2 * D),        # i, f
                            jnp.arange(3 * D, 4 * D),    # o
                            jnp.arange(2 * D, 3 * D)])   # g
    wih = jnp.transpose(w_ih[:, perm, :], (0, 2, 1))     # (2, D, 4D)
    whh = jnp.transpose(w_hh[:, perm, :], (0, 2, 1))     # (2, D, 4D)
    b = (b_ih + b_hh)[:, perm].reshape(2, 1, 4 * D)      # (2, 1, 4D)
    wfc = jnp.transpose(w_fc).reshape(2, D, D)           # (2D, D) -> (2, D, D)
    bfc = b_fc.reshape(1, D)
    return wih, whh, b, wfc, bfc


def bilstm_reference(X, h0, c0, w_ih, w_hh, b_ih, b_hh, w_fc, b_fc):
    """Pure-JAX reference using PyTorch-layout params (gate order [i|f|g|o])."""
    B, T, D = X.shape

    def step(x_t, h, c, wih, whh, bih, bhh):
        gates = x_t @ wih.T + bih + h @ whh.T + bhh
        i = jax.nn.sigmoid(gates[:, 0 * D:1 * D])
        f = jax.nn.sigmoid(gates[:, 1 * D:2 * D])
        g = jnp.tanh(gates[:, 2 * D:3 * D])
        o = jax.nn.sigmoid(gates[:, 3 * D:4 * D])
        c_new = f * c + i * g
        return o * jnp.tanh(c_new), c_new

    h, c = h0[0], c0[0]
    for t in range(T):
        h, c = step(X[:, t, :], h, c, w_ih[0], w_hh[0], b_ih[0], b_hh[0])
    h_bwd, _ = step(X[:, T - 1, :], h0[1], c0[1],
                    w_ih[1], w_hh[1], b_ih[1], b_hh[1])
    return jnp.concatenate([h, h_bwd], axis=-1) @ w_fc.T + b_fc


if __name__ == "__main__":
    B, T, D = 4, 8, 32        # batch, seq, decoder_dim

    key = jax.random.PRNGKey(0)
    keys = jax.random.split(key, 12)

    def u(kk, shape, bound):
        return jax.random.uniform(kk, shape, jnp.float32, -bound, bound)

    # PyTorch-layout parameters (uniform(-1/sqrt(H), 1/sqrt(H)) like nn.LSTM).
    k_lstm = 1.0 / (D ** 0.5)
    k_fc = 1.0 / ((2 * D) ** 0.5)

    w_ih = jnp.stack([u(keys[0], (4 * D, D), k_lstm),
                      u(keys[1], (4 * D, D), k_lstm)])     # (2, 4D, D)
    w_hh = jnp.stack([u(keys[2], (4 * D, D), k_lstm),
                      u(keys[3], (4 * D, D), k_lstm)])     # (2, 4D, D)
    b_ih = jnp.stack([u(keys[4], (4 * D,), k_lstm),
                      u(keys[5], (4 * D,), k_lstm)])       # (2, 4D)
    b_hh = jnp.stack([u(keys[6], (4 * D,), k_lstm),
                      u(keys[7], (4 * D,), k_lstm)])       # (2, 4D)

    w_fc = u(keys[8], (D, 2 * D), k_fc)                    # (D, 2D)
    b_fc = u(keys[9], (D,), k_fc)                          # (D,)

    # Inputs matching the module's forward signature.
    X = jax.random.normal(keys[10], (B, T, D), jnp.float32)
    hidden_state = 0.1 * jax.random.normal(keys[11], (2, B, D), jnp.float32)
    cell_state = jnp.zeros((2, B, D), jnp.float32)

    wih, whh, b, wfc, bfc = pack_params(w_ih, w_hh, b_ih, b_hh, w_fc, b_fc)

    out = bilstm_forward(X, hidden_state, cell_state, wih, whh, b, wfc, bfc)
    out = jax.block_until_ready(out)
    assert out.shape == (B, D) and out.dtype == jnp.float32

    # Cross-check against a pure-JAX reference (validates the [i|f|o|g] gate
    # reorder is applied consistently to wih / whh / b).
    ref = jax.block_until_ready(
        bilstm_reference(X, hidden_state, cell_state,
                         w_ih, w_hh, b_ih, b_hh, w_fc, b_fc))
    max_err = float(jnp.max(jnp.abs(out - ref)))
    assert max_err < 2e-2, f"mismatch vs pure-JAX reference: {max_err}"

    print("KERNEL_OK")
</pallas_src>

<mosaic_0001>
module attributes {stable_mosaic.version = 11 : i64} {
  func.func @bilstm_kernel(%arg0: memref<4x8x32xf32, #tpu.memory_space<vmem>>, %arg1: memref<2x4x32xf32, #tpu.memory_space<vmem>>, %arg2: memref<2x4x32xf32, #tpu.memory_space<vmem>>, %arg3: memref<2x32x128xf32, #tpu.memory_space<vmem>>, %arg4: memref<2x32x128xf32, #tpu.memory_space<vmem>>, %arg5: memref<2x1x128xf32, #tpu.memory_space<vmem>>, %arg6: memref<2x32x32xf32, #tpu.memory_space<vmem>>, %arg7: memref<1x32xf32, #tpu.memory_space<vmem>>, %arg8: memref<4x32xf32, #tpu.memory_space<vmem>>) attributes {dimension_semantics = [], scalar_prefetch = 0 : i64, scratch_operands = 0 : i64, tpu.core_type = #tpu.core_type<tc>} {
    %c0 = arith.constant 0 : index
    %c0_0 = arith.constant 0 : index
    %c0_1 = arith.constant 0 : index
    %0 = vector.load %arg0[%c0, %c0_0, %c0_1] : memref<4x8x32xf32, #tpu.memory_space<vmem>>, vector<4x8x32xf32>
    %1 = tpu.iota {dimensions = array<i32: 1>} : vector<4x128xi32>
    %c96_i32 = arith.constant 96 : i32
    %2 = vector.broadcast %c96_i32 : i32 to vector<4x128xi32>
    %3 = arith.cmpi slt, %1, %2 : vector<4x128xi32>
    %4 = vector.shape_cast %0 : vector<4x8x32xf32> to vector<32x32xf32>
    %c0_2 = arith.constant 0 : index
    %c0_3 = arith.constant 0 : index
    %c0_4 = arith.constant 0 : index
    %5 = vector.load %arg3[%c0_2, %c0_3, %c0_4] : memref<2x32x128xf32, #tpu.memory_space<vmem>>, vector<1x32x128xf32>
    %6 = vector.shape_cast %5 : vector<1x32x128xf32> to vector<32x128xf32>
    %cst = arith.constant dense<0.000000e+00> : vector<32x128xf32>
    %7 = tpu.matmul %4, %6, %cst {dimension_numbers = #tpu.dot_dimension_numbers<[1], [0], [0], [1], [0, 0, 1, 1], [], []>} : vector<32x32xf32>, vector<32x128xf32>, vector<32x128xf32> -> vector<32x128xf32>
    %c0_5 = arith.constant 0 : index
    %c0_6 = arith.constant 0 : index
    %c0_7 = arith.constant 0 : index
    %8 = vector.load %arg5[%c0_5, %c0_6, %c0_7] : memref<2x1x128xf32, #tpu.memory_space<vmem>>, vector<1x1x128xf32>
    %9 = vector.shape_cast %8 : vector<1x1x128xf32> to vector<1x128xf32>
    %10 = vector.broadcast %9 : vector<1x128xf32> to vector<32x128xf32>
    %11 = arith.addf %7, %10 : vector<32x128xf32>
    %12 = vector.shape_cast %11 : vector<32x128xf32> to vector<4x8x128xf32>
    %c0_8 = arith.constant 0 : index
    %c0_9 = arith.constant 0 : index
    %c0_10 = arith.constant 0 : index
    %13 = vector.load %arg4[%c0_8, %c0_9, %c0_10] : memref<2x32x128xf32, #tpu.memory_space<vmem>>, vector<1x32x128xf32>
    %14 = vector.shape_cast %13 : vector<1x32x128xf32> to vector<32x128xf32>
    %c0_11 = arith.constant 0 : index
    %c0_12 = arith.constant 0 : index
    %c0_13 = arith.constant 0 : index
    %15 = vector.load %arg1[%c0_11, %c0_12, %c0_13] : memref<2x4x32xf32, #tpu.memory_space<vmem>>, vector<1x4x32xf32>
    %16 = vector.shape_cast %15 : vector<1x4x32xf32> to vector<4x32xf32>
    %c0_14 = arith.constant 0 : index
    %c0_15 = arith.constant 0 : index
    %c0_16 = arith.constant 0 : index
    %17 = vector.load %arg2[%c0_14, %c0_15, %c0_16] : memref<2x4x32xf32, #tpu.memory_space<vmem>>, vector<1x4x32xf32>
    %18 = vector.shape_cast %17 : vector<1x4x32xf32> to vector<4x32xf32>
    %19 = vector.extract_strided_slice %12 {offsets = [0, 0, 0], sizes = [4, 1, 128], strides = [1, 1, 1]} : vector<4x8x128xf32> to vector<4x1x128xf32>
    %20 = vector.shape_cast %19 : vector<4x1x128xf32> to vector<4x128xf32>
    %cst_17 = arith.constant dense<0.000000e+00> : vector<4x128xf32>
    %21 = tpu.matmul %16, %14, %cst_17 {dimension_numbers = #tpu.dot_dimension_numbers<[1], [0], [0], [1], [0, 0, 1, 1], [], []>} : vector<4x32xf32>, vector<32x128xf32>, vector<4x128xf32> -> vector<4x128xf32>
    %22 = arith.addf %20, %21 : vector<4x128xf32>
    %23 = arith.negf %22 : vector<4x128xf32>
    %24 = math.exp %23 : vector<4x128xf32>
    %cst_18 = arith.constant 1.000000e+00 : f32
    %25 = vector.broadcast %cst_18 : f32 to vector<4x128xf32>
    %26 = arith.addf %25, %24 : vector<4x128xf32>
    %27 = arith.divf %25, %26 : vector<4x128xf32>
    %28 = math.tanh %22 : vector<4x128xf32>
    %29 = arith.select %3, %27, %28 : vector<4x128xi1>, vector<4x128xf32>
    %30 = vector.extract_strided_slice %29 {offsets = [0, 0], sizes = [4, 32], strides = [1, 1]} : vector<4x128xf32> to vector<4x32xf32>
    %31 = vector.extract_strided_slice %29 {offsets = [0, 32], sizes = [4, 32], strides = [1, 1]} : vector<4x128xf32> to vector<4x32xf32>
    %32 = vector.extract_strided_slice %29 {offsets = [0, 64], sizes = [4, 32], strides = [1, 1]} : vector<4x128xf32> to vector<4x32xf32>
    %33 = vector.extract_strided_slice %29 {offsets = [0, 96], sizes = [4, 32], strides = [1, 1]} : vector<4x128xf32> to vector<4x32xf32>
    %34 = arith.mulf %31, %18 : vector<4x32xf32>
    %35 = arith.mulf %30, %33 : vector<4x32xf32>
    %36 = arith.addf %34, %35 : vector<4x32xf32>
    %37 = math.tanh %36 : vector<4x32xf32>
    %38 = arith.mulf %32, %37 : vector<4x32xf32>
    %39 = vector.extract_strided_slice %12 {offsets = [0, 1, 0], sizes = [4, 1, 128], strides = [1, 1, 1]} : vector<4x8x128xf32> to vector<4x1x128xf32>
    %40 = vector.shape_cast %39 : vector<4x1x128xf32> to vector<4x128xf32>
    %cst_19 = arith.constant dense<0.000000e+00> : vector<4x128xf32>
    %41 = tpu.matmul %38, %14, %cst_19 {dimension_numbers = #tpu.dot_dimension_numbers<[1], [0], [0], [1], [0, 0, 1, 1], [], []>} : vector<4x32xf32>, vector<32x128xf32>, vector<4x128xf32> -> vector<4x128xf32>
    %42 = arith.addf %40, %41 : vector<4x128xf32>
    %43 = arith.negf %42 : vector<4x128xf32>
    %44 = math.exp %43 : vector<4x128xf32>
    %cst_20 = arith.constant 1.000000e+00 : f32
    %45 = vector.broadcast %cst_20 : f32 to vector<4x128xf32>
    %46 = arith.addf %45, %44 : vector<4x128xf32>
    %47 = arith.divf %45, %46 : vector<4x128xf32>
    %48 = math.tanh %42 : vector<4x128xf32>
    %49 = arith.select %3, %47, %48 : vector<4x128xi1>, vector<4x128xf32>
    %50 = vector.extract_strided_slice %49 {offsets = [0, 0], sizes = [4, 32], strides = [1, 1]} : vector<4x128xf32> to vector<4x32xf32>
    %51 = vector.extract_strided_slice %49 {offsets = [0, 32], sizes = [4, 32], strides = [1, 1]} : vector<4x128xf32> to vector<4x32xf32>
    %52 = vector.extract_strided_slice %49 {offsets = [0, 64], sizes = [4, 32], strides = [1, 1]} : vector<4x128xf32> to vector<4x32xf32>
    %53 = vector.extract_strided_slice %49 {offsets = [0, 96], sizes = [4, 32], strides = [1, 1]} : vector<4x128xf32> to vector<4x32xf32>
    %54 = arith.mulf %51, %36 : vector<4x32xf32>
    %55 = arith.mulf %50, %53 : vector<4x32xf32>
    %56 = arith.addf %54, %55 : vector<4x32xf32>
    %57 = math.tanh %56 : vector<4x32xf32>
    %58 = arith.mulf %52, %57 : vector<4x32xf32>
    %59 = vector.extract_strided_slice %12 {offsets = [0, 2, 0], sizes = [4, 1, 128], strides = [1, 1, 1]} : vector<4x8x128xf32> to vector<4x1x128xf32>
    %60 = vector.shape_cast %59 : vector<4x1x128xf32> to vector<4x128xf32>
    %cst_21 = arith.constant dense<0.000000e+00> : vector<4x128xf32>
    %61 = tpu.matmul %58, %14, %cst_21 {dimension_numbers = #tpu.dot_dimension_numbers<[1], [0], [0], [1], [0, 0, 1, 1], [], []>} : vector<4x32xf32>, vector<32x128xf32>, vector<4x128xf32> -> vector<4x128xf32>
    %62 = arith.addf %60, %61 : vector<4x128xf32>
    %63 = arith.negf %62 : vector<4x128xf32>
    %64 = math.exp %63 : vector<4x128xf32>
    %cst_22 = arith.constant 1.000000e+00 : f32
    %65 = vector.broadcast %cst_22 : f32 to vector<4x128xf32>
    %66 = arith.addf %65, %64 : vector<4x128xf32>
    %67 = arith.divf %65, %66 : vector<4x128xf32>
    %68 = math.tanh %62 : vector<4x128xf32>
    %69 = arith.select %3, %67, %68 : vector<4x128xi1>, vector<4x128xf32>
    %70 = vector.extract_strided_slice %69 {offsets = [0, 0], sizes = [4, 32], strides = [1, 1]} : vector<4x128xf32> to vector<4x32xf32>
    %71 = vector.extract_strided_slice %69 {offsets = [0, 32], sizes = [4, 32], strides = [1, 1]} : vector<4x128xf32> to vector<4x32xf32>
    %72 = vector.extract_strided_slice %69 {offsets = [0, 64], sizes = [4, 32], strides = [1, 1]} : vector<4x128xf32> to vector<4x32xf32>
    %73 = vector.extract_strided_slice %69 {offsets = [0, 96], sizes = [4, 32], strides = [1, 1]} : vector<4x128xf32> to vector<4x32xf32>
    %74 = arith.mulf %71, %56 : vector<4x32xf32>
    %75 = arith.mulf %70, %73 : vector<4x32xf32>
    %76 = arith.addf %74, %75 : vector<4x32xf32>
    %77 = math.tanh %76 : vector<4x32xf32>
    %78 = arith.mulf %72, %77 : vector<4x32xf32>
    %79 = vector.extract_strided_slice %12 {offsets = [0, 3, 0], sizes = [4, 1, 128], strides = [1, 1, 1]} : vector<4x8x128xf32> to vector<4x1x128xf32>
    %80 = vector.shape_cast %79 : vector<4x1x128xf32> to vector<4x128xf32>
    %cst_23 = arith.constant dense<0.000000e+00> : vector<4x128xf32>
    %81 = tpu.matmul %78, %14, %cst_23 {dimension_numbers = #tpu.dot_dimension_numbers<[1], [0], [0], [1], [0, 0, 1, 1], [], []>} : vector<4x32xf32>, vector<32x128xf32>, vector<4x128xf32> -> vector<4x128xf32>
    %82 = arith.addf %80, %81 : vector<4x128xf32>
    %83 = arith.negf %82 : vector<4x128xf32>
    %84 = math.exp %83 : vector<4x128xf32>
    %cst_24 = arith.constant 1.000000e+00 : f32
    %85 = vector.broadcast %cst_24 : f32 to vector<4x128xf32>
    %86 = arith.addf %85, %84 : vector<4x128xf32>
    %87 = arith.divf %85, %86 : vector<4x128xf32>
    %88 = math.tanh %82 : vector<4x128xf32>
    %89 = arith.select %3, %87, %88 : vector<4x128xi1>, vector<4x128xf32>
    %90 = vector.extract_strided_slice %89 {offsets = [0, 0], sizes = [4, 32], strides = [1, 1]} : vector<4x128xf32> to vector<4x32xf32>
    %91 = vector.extract_strided_slice %89 {offsets = [0, 32], sizes = [4, 32], strides = [1, 1]} : vector<4x128xf32> to vector<4x32xf32>
    %92 = vector.extract_strided_slice %89 {offsets = [0, 64], sizes = [4, 32], strides = [1, 1]} : vector<4x128xf32> to vector<4x32xf32>
    %93 = vector.extract_strided_slice %89 {offsets = [0, 96], sizes = [4, 32], strides = [1, 1]} : vector<4x128xf32> to vector<4x32xf32>
    %94 = arith.mulf %91, %76 : vector<4x32xf32>
    %95 = arith.mulf %90, %93 : vector<4x32xf32>
    %96 = arith.addf %94, %95 : vector<4x32xf32>
    %97 = math.tanh %96 : vector<4x32xf32>
    %98 = arith.mulf %92, %97 : vector<4x32xf32>
    %99 = vector.extract_strided_slice %12 {offsets = [0, 4, 0], sizes = [4, 1, 128], strides = [1, 1, 1]} : vector<4x8x128xf32> to vector<4x1x128xf32>
    %100 = vector.shape_cast %99 : vector<4x1x128xf32> to vector<4x128xf32>
    %cst_25 = arith.constant dense<0.000000e+00> : vector<4x128xf32>
    %101 = tpu.matmul %98, %14, %cst_25 {dimension_numbers = #tpu.dot_dimension_numbers<[1], [0], [0], [1], [0, 0, 1, 1], [], []>} : vector<4x32xf32>, vector<32x128xf32>, vector<4x128xf32> -> vector<4x128xf32>
    %102 = arith.addf %100, %101 : vector<4x128xf32>
    %103 = arith.negf %102 : vector<4x128xf32>
    %104 = math.exp %103 : vector<4x128xf32>
    %cst_26 = arith.constant 1.000000e+00 : f32
    %105 = vector.broadcast %cst_26 : f32 to vector<4x128xf32>
    %106 = arith.addf %105, %104 : vector<4x128xf32>
    %107 = arith.divf %105, %106 : vector<4x128xf32>
    %108 = math.tanh %102 : vector<4x128xf32>
    %109 = arith.select %3, %107, %108 : vector<4x128xi1>, vector<4x128xf32>
    %110 = vector.extract_strided_slice %109 {offsets = [0, 0], sizes = [4, 32], strides = [1, 1]} : vector<4x128xf32> to vector<4x32xf32>
    %111 = vector.extract_strided_slice %109 {offsets = [0, 32], sizes = [4, 32], strides = [1, 1]} : vector<4x128xf32> to vector<4x32xf32>
    %112 = vector.extract_strided_slice %109 {offsets = [0, 64], sizes = [4, 32], strides = [1, 1]} : vector<4x128xf32> to vector<4x32xf32>
    %113 = vector.extract_strided_slice %109 {offsets = [0, 96], sizes = [4, 32], strides = [1, 1]} : vector<4x128xf32> to vector<4x32xf32>
    %114 = arith.mulf %111, %96 : vector<4x32xf32>
    %115 = arith.mulf %110, %113 : vector<4x32xf32>
    %116 = arith.addf %114, %115 : vector<4x32xf32>
    %117 = math.tanh %116 : vector<4x32xf32>
    %118 = arith.mulf %112, %117 : vector<4x32xf32>
    %119 = vector.extract_strided_slice %12 {offsets = [0, 5, 0], sizes = [4, 1, 128], strides = [1, 1, 1]} : vector<4x8x128xf32> to vector<4x1x128xf32>
    %120 = vector.shape_cast %119 : vector<4x1x128xf32> to vector<4x128xf32>
    %cst_27 = arith.constant dense<0.000000e+00> : vector<4x128xf32>
    %121 = tpu.matmul %118, %14, %cst_27 {dimension_numbers = #tpu.dot_dimension_numbers<[1], [0], [0], [1], [0, 0, 1, 1], [], []>} : vector<4x32xf32>, vector<32x128xf32>, vector<4x128xf32> -> vector<4x128xf32>
    %122 = arith.addf %120, %121 : vector<4x128xf32>
    %123 = arith.negf %122 : vector<4x128xf32>
    %124 = math.exp %123 : vector<4x128xf32>
    %cst_28 = arith.constant 1.000000e+00 : f32
    %125 = vector.broadcast %cst_28 : f32 to vector<4x128xf32>
    %126 = arith.addf %125, %124 : vector<4x128xf32>
    %127 = arith.divf %125, %126 : vector<4x128xf32>
    %128 = math.tanh %122 : vector<4x128xf32>
    %129 = arith.select %3, %127, %128 : vector<4x128xi1>, vector<4x128xf32>
    %130 = vector.extract_strided_slice %129 {offsets = [0, 0], sizes = [4, 32], strides = [1, 1]} : vector<4x128xf32> to vector<4x32xf32>
    %131 = vector.extract_strided_slice %129 {offsets = [0, 32], sizes = [4, 32], strides = [1, 1]} : vector<4x128xf32> to vector<4x32xf32>
    %132 = vector.extract_strided_slice %129 {offsets = [0, 64], sizes = [4, 32], strides = [1, 1]} : vector<4x128xf32> to vector<4x32xf32>
    %133 = vector.extract_strided_slice %129 {offsets = [0, 96], sizes = [4, 32], strides = [1, 1]} : vector<4x128xf32> to vector<4x32xf32>
    %134 = arith.mulf %131, %116 : vector<4x32xf32>
    %135 = arith.mulf %130, %133 : vector<4x32xf32>
    %136 = arith.addf %134, %135 : vector<4x32xf32>
    %137 = math.tanh %136 : vector<4x32xf32>
    %138 = arith.mulf %132, %137 : vector<4x32xf32>
    %139 = vector.extract_strided_slice %12 {offsets = [0, 6, 0], sizes = [4, 1, 128], strides = [1, 1, 1]} : vector<4x8x128xf32> to vector<4x1x128xf32>
    %140 = vector.shape_cast %139 : vector<4x1x128xf32> to vector<4x128xf32>
    %cst_29 = arith.constant dense<0.000000e+00> : vector<4x128xf32>
    %141 = tpu.matmul %138, %14, %cst_29 {dimension_numbers = #tpu.dot_dimension_numbers<[1], [0], [0], [1], [0, 0, 1, 1], [], []>} : vector<4x32xf32>, vector<32x128xf32>, vector<4x128xf32> -> vector<4x128xf32>
    %142 = arith.addf %140, %141 : vector<4x128xf32>
    %143 = arith.negf %142 : vector<4x128xf32>
    %144 = math.exp %143 : vector<4x128xf32>
    %cst_30 = arith.constant 1.000000e+00 : f32
    %145 = vector.broadcast %cst_30 : f32 to vector<4x128xf32>
    %146 = arith.addf %145, %144 : vector<4x128xf32>
    %147 = arith.divf %145, %146 : vector<4x128xf32>
    %148 = math.tanh %142 : vector<4x128xf32>
    %149 = arith.select %3, %147, %148 : vector<4x128xi1>, vector<4x128xf32>
    %150 = vector.extract_strided_slice %149 {offsets = [0, 0], sizes = [4, 32], strides = [1, 1]} : vector<4x128xf32> to vector<4x32xf32>
    %151 = vector.extract_strided_slice %149 {offsets = [0, 32], sizes = [4, 32], strides = [1, 1]} : vector<4x128xf32> to vector<4x32xf32>
    %152 = vector.extract_strided_slice %149 {offsets = [0, 64], sizes = [4, 32], strides = [1, 1]} : vector<4x128xf32> to vector<4x32xf32>
    %153 = vector.extract_strided_slice %149 {offsets = [0, 96], sizes = [4, 32], strides = [1, 1]} : vector<4x128xf32> to vector<4x32xf32>
    %154 = arith.mulf %151, %136 : vector<4x32xf32>
    %155 = arith.mulf %150, %153 : vector<4x32xf32>
    %156 = arith.addf %154, %155 : vector<4x32xf32>
    %157 = math.tanh %156 : vector<4x32xf32>
    %158 = arith.mulf %152, %157 : vector<4x32xf32>
    %159 = vector.extract_strided_slice %12 {offsets = [0, 7, 0], sizes = [4, 1, 128], strides = [1, 1, 1]} : vector<4x8x128xf32> to vector<4x1x128xf32>
    %160 = vector.shape_cast %159 : vector<4x1x128xf32> to vector<4x128xf32>
    %cst_31 = arith.constant dense<0.000000e+00> : vector<4x128xf32>
    %161 = tpu.matmul %158, %14, %cst_31 {dimension_numbers = #tpu.dot_dimension_numbers<[1], [0], [0], [1], [0, 0, 1, 1], [], []>} : vector<4x32xf32>, vector<32x128xf32>, vector<4x128xf32> -> vector<4x128xf32>
    %162 = arith.addf %160, %161 : vector<4x128xf32>
    %163 = arith.negf %162 : vector<4x128xf32>
    %164 = math.exp %163 : vector<4x128xf32>
    %cst_32 = arith.constant 1.000000e+00 : f32
    %165 = vector.broadcast %cst_32 : f32 to vector<4x128xf32>
    %166 = arith.addf %165, %164 : vector<4x128xf32>
    %167 = arith.divf %165, %166 : vector<4x128xf32>
    %168 = math.tanh %162 : vector<4x128xf32>
    %169 = arith.select %3, %167, %168 : vector<4x128xi1>, vector<4x128xf32>
    %170 = vector.extract_strided_slice %169 {offsets = [0, 0], sizes = [4, 32], strides = [1, 1]} : vector<4x128xf32> to vector<4x32xf32>
    %171 = vector.extract_strided_slice %169 {offsets = [0, 32], sizes = [4, 32], strides = [1, 1]} : vector<4x128xf32> to vector<4x32xf32>
    %172 = vector.extract_strided_slice %169 {offsets = [0, 64], sizes = [4, 32], strides = [1, 1]} : vector<4x128xf32> to vector<4x32xf32>
    %173 = vector.extract_strided_slice %169 {offsets = [0, 96], sizes = [4, 32], strides = [1, 1]} : vector<4x128xf32> to vector<4x32xf32>
    %174 = arith.mulf %171, %156 : vector<4x32xf32>
    %175 = arith.mulf %170, %173 : vector<4x32xf32>
    %176 = arith.addf %174, %175 : vector<4x32xf32>
    %177 = math.tanh %176 : vector<4x32xf32>
    %178 = arith.mulf %172, %177 : vector<4x32xf32>
    %179 = vector.extract_strided_slice %0 {offsets = [0, 7, 0], sizes = [4, 1, 32], strides = [1, 1, 1]} : vector<4x8x32xf32> to vector<4x1x32xf32>
    %180 = vector.shape_cast %179 : vector<4x1x32xf32> to vector<4x32xf32>
    %c1 = arith.constant 1 : index
    %c0_33 = arith.constant 0 : index
    %c0_34 = arith.constant 0 : index
    %181 = vector.load %arg3[%c1, %c0_33, %c0_34] : memref<2x32x128xf32, #tpu.memory_space<vmem>>, vector<1x32x128xf32>
    %182 = vector.shape_cast %181 : vector<1x32x128xf32> to vector<32x128xf32>
    %cst_35 = arith.constant dense<0.000000e+00> : vector<4x128xf32>
    %183 = tpu.matmul %180, %182, %cst_35 {dimension_numbers = #tpu.dot_dimension_numbers<[1], [0], [0], [1], [0, 0, 1, 1], [], []>} : vector<4x32xf32>, vector<32x128xf32>, vector<4x128xf32> -> vector<4x128xf32>
    %c1_36 = arith.constant 1 : index
    %c0_37 = arith.constant 0 : index
    %c0_38 = arith.constant 0 : index
    %184 = vector.load %arg5[%c1_36, %c0_37, %c0_38] : memref<2x1x128xf32, #tpu.memory_space<vmem>>, vector<1x1x128xf32>
    %185 = vector.shape_cast %184 : vector<1x1x128xf32> to vector<1x128xf32>
    %186 = vector.broadcast %185 : vector<1x128xf32> to vector<4x128xf32>
    %187 = arith.addf %183, %186 : vector<4x128xf32>
    %c1_39 = arith.constant 1 : index
    %c0_40 = arith.constant 0 : index
    %c0_41 = arith.constant 0 : index
    %188 = vector.load %arg1[%c1_39, %c0_40, %c0_41] : memref<2x4x32xf32, #tpu.memory_space<vmem>>, vector<1x4x32xf32>
    %189 = vector.shape_cast %188 : vector<1x4x32xf32> to vector<4x32xf32>
    %c1_42 = arith.constant 1 : index
    %c0_43 = arith.constant 0 : index
    %c0_44 = arith.constant 0 : index
    %190 = vector.load %arg2[%c1_42, %c0_43, %c0_44] : memref<2x4x32xf32, #tpu.memory_space<vmem>>, vector<1x4x32xf32>
    %191 = vector.shape_cast %190 : vector<1x4x32xf32> to vector<4x32xf32>
    %c1_45 = arith.constant 1 : index
    %c0_46 = arith.constant 0 : index
    %c0_47 = arith.constant 0 : index
    %192 = vector.load %arg4[%c1_45, %c0_46, %c0_47] : memref<2x32x128xf32, #tpu.memory_space<vmem>>, vector<1x32x128xf32>
    %193 = vector.shape_cast %192 : vector<1x32x128xf32> to vector<32x128xf32>
    %cst_48 = arith.constant dense<0.000000e+00> : vector<4x128xf32>
    %194 = tpu.matmul %189, %193, %cst_48 {dimension_numbers = #tpu.dot_dimension_numbers<[1], [0], [0], [1], [0, 0, 1, 1], [], []>} : vector<4x32xf32>, vector<32x128xf32>, vector<4x128xf32> -> vector<4x128xf32>
    %195 = arith.addf %187, %194 : vector<4x128xf32>
    %196 = arith.negf %195 : vector<4x128xf32>
    %197 = math.exp %196 : vector<4x128xf32>
    %cst_49 = arith.constant 1.000000e+00 : f32
    %198 = vector.broadcast %cst_49 : f32 to vector<4x128xf32>
    %199 = arith.addf %198, %197 : vector<4x128xf32>
    %200 = arith.divf %198, %199 : vector<4x128xf32>
    %201 = math.tanh %195 : vector<4x128xf32>
    %202 = arith.select %3, %200, %201 : vector<4x128xi1>, vector<4x128xf32>
    %203 = vector.extract_strided_slice %202 {offsets = [0, 0], sizes = [4, 32], strides = [1, 1]} : vector<4x128xf32> to vector<4x32xf32>
    %204 = vector.extract_strided_slice %202 {offsets = [0, 32], sizes = [4, 32], strides = [1, 1]} : vector<4x128xf32> to vector<4x32xf32>
    %205 = vector.extract_strided_slice %202 {offsets = [0, 64], sizes = [4, 32], strides = [1, 1]} : vector<4x128xf32> to vector<4x32xf32>
    %206 = vector.extract_strided_slice %202 {offsets = [0, 96], sizes = [4, 32], strides = [1, 1]} : vector<4x128xf32> to vector<4x32xf32>
    %207 = arith.mulf %204, %191 : vector<4x32xf32>
    %208 = arith.mulf %203, %206 : vector<4x32xf32>
    %209 = arith.addf %207, %208 : vector<4x32xf32>
    %210 = math.tanh %209 : vector<4x32xf32>
    %211 = arith.mulf %205, %210 : vector<4x32xf32>
    %c0_50 = arith.constant 0 : index
    %c0_51 = arith.constant 0 : index
    %c0_52 = arith.constant 0 : index
    %212 = vector.load %arg6[%c0_50, %c0_51, %c0_52] : memref<2x32x32xf32, #tpu.memory_space<vmem>>, vector<1x32x32xf32>
    %213 = vector.shape_cast %212 : vector<1x32x32xf32> to vector<32x32xf32>
    %cst_53 = arith.constant dense<0.000000e+00> : vector<4x32xf32>
    %214 = tpu.matmul %178, %213, %cst_53 {dimension_numbers = #tpu.dot_dimension_numbers<[1], [0], [0], [1], [0, 0, 1, 1], [], []>} : vector<4x32xf32>, vector<32x32xf32>, vector<4x32xf32> -> vector<4x32xf32>
    %c1_54 = arith.constant 1 : index
    %c0_55 = arith.constant 0 : index
    %c0_56 = arith.constant 0 : index
    %215 = vector.load %arg6[%c1_54, %c0_55, %c0_56] : memref<2x32x32xf32, #tpu.memory_space<vmem>>, vector<1x32x32xf32>
    %216 = vector.shape_cast %215 : vector<1x32x32xf32> to vector<32x32xf32>
    %cst_57 = arith.constant dense<0.000000e+00> : vector<4x32xf32>
    %217 = tpu.matmul %211, %216, %cst_57 {dimension_numbers = #tpu.dot_dimension_numbers<[1], [0], [0], [1], [0, 0, 1, 1], [], []>} : vector<4x32xf32>, vector<32x32xf32>, vector<4x32xf32> -> vector<4x32xf32>
    %218 = arith.addf %214, %217 : vector<4x32xf32>
    %c0_58 = arith.constant 0 : index
    %c0_59 = arith.constant 0 : index
    %219 = vector.load %arg7[%c0_58, %c0_59] : memref<1x32xf32, #tpu.memory_space<vmem>>, vector<1x32xf32>
    %220 = vector.broadcast %219 : vector<1x32xf32> to vector<4x32xf32>
    %221 = arith.addf %218, %220 : vector<4x32xf32>
    %c0_60 = arith.constant 0 : index
    %c0_61 = arith.constant 0 : index
    %222 = vector.load %arg8[%c0_60, %c0_61] : memref<4x32xf32, #tpu.memory_space<vmem>>, vector<4x32xf32>
    tpu.vector_store %arg8[%c0_60, %c0_61], %221 {strides = array<i32>} : memref<4x32xf32, #tpu.memory_space<vmem>>, vector<4x32xf32>,
    return
  }
}

</mosaic_0001>

<bundles_post_ra>
// kernel: tpu_custom_call.1
= control target key start
LH: loop header
LB: loop body
LE: loop exit
PB: predicated region body
PF: predicated region fallthrough
CT: control target
= control target key end

     0   :  { %13 = vsyncpa [#allocation3], 0  ;;  %s2709_s0 = inlined_call_operand.hbm [shape: f32[4,8,32], index: 0, kind: input, shape index: {}]   ;;  %s2710_s1 = inlined_call_operand.hbm [shape: f32[2,4,32], index: 1, kind: input, shape index: {}]   ;;  %s2711_s2 = inlined_call_operand.hbm [shape: f32[2,4,32], index: 2, kind: input, shape index: {}]   ;;  %s2712_s3 = inlined_call_operand.hbm [shape: f32[2,32,128], index: 3, kind: input, shape index: {}]   ;;  %s2713_s4 = inlined_call_operand.hbm [shape: f32[2,32,128], index: 4, kind: input, shape index: {}]   ;;  %s2714_s5 = inlined_call_operand.vmem [shape: f32[2,1,128], index: 5, kind: input, shape index: {}]   ;;  %s2715_s6 = inlined_call_operand.hbm [shape: f32[2,32,32], index: 6, kind: input, shape index: {}]   ;;  %s2716_s7 = inlined_call_operand.vmem [shape: f32[1,32], index: 7, kind: input, shape index: {}]   ;;  %s2717_s8 = inlined_call_operand.hbm [shape: f32[4,32], index: 8, kind: output, shape index: {}]  }
   0x1   :  { %14 = vsyncpa [#allocation6], 0 }
   0x2   :  { %15 = vsyncpa [#allocation9], 0 }
   0x3   :  { %16 = vsyncpa [#allocation12], 0  ;;  %s35_s29 = sshll.u32 %s2710_s1, 4  ;;  %s36_s29 = int_to_ptr.hbm [resolvable:$true] %s35_s29 }
   0x4   :  { %17 = vsyncpa [#allocation4], 0  ;;  %s2120_s30 = smov [#allocation5]   ;;  %s2121_s10 = smov 64  }
   0x5   :  { %s37_s9 = sshll.u32 %s2120_s30, 4  ;;  %s2122_s11 = smov 4   ;;  %s38_s9 = int_to_ptr.vmem [resolvable:$true] %s37_s9 }
   0x6   :  { %43 = dma.hbm_to_vmem [thread:$0]  %s36_s29, 128, %s38_s9, [#allocation6], %s2121_s10, %s2121_s10, %s2122_s11  }
   0x7   :  { %s61_s14 = sshll.u32 %s2712_s3, 4  ;;  %s2123_s15 = smov [#allocation8]   ;;  %s62_s14 = int_to_ptr.hbm [resolvable:$true] %s61_s14 }
   0x8   :  { %s63_s16 = sshll.u32 %s2123_s15, 4  ;;  %s22_s1 = sshll.u32 %s2709_s0, 4  ;;  %s64_s16 = int_to_ptr.vmem [resolvable:$true] %s63_s16  ;;  %s23_s1 = int_to_ptr.hbm [resolvable:$true] %s22_s1 }
   0x9   :  { %s2124_s19 = smov 128   ;;  %s2125_s20 = smov 8  }
   0xa   :  { %69 = dma.hbm_to_vmem [thread:$0]  %s62_s14, 1024, %s64_s16, [#allocation9], %s2124_s19, %s2124_s19, %s2125_s20  }
   0xb   :  { %s48_s23 = sshll.u32 %s2711_s2, 4  ;;  %s2126_s24 = smov [#allocation2]   ;;  %s49_s23 = int_to_ptr.hbm [resolvable:$true] %s48_s23 }
   0xc   :  { %s24_s25 = sshll.u32 %s2126_s24, 4  ;;  %s2127_s3 = smov [#allocation7]   ;;  %s25_s25 = int_to_ptr.vmem [resolvable:$true] %s24_s25 }
   0xd   :  { %30 = dma.hbm_to_vmem [thread:$0]  %s23_s1, 512, %s25_s25, [#allocation3], %s2124_s19, %s2124_s19, %s2125_s20  }
   0xe   :  { %s50_s26 = sshll.u32 %s2127_s3, 4  ;;  %s74_s0 = sshll.u32 %s2713_s4, 4  ;;  %s51_s26 = int_to_ptr.vmem [resolvable:$true] %s50_s26  ;;  %s75_s0 = int_to_ptr.hbm [resolvable:$true] %s74_s0 }
   0xf   :  { %56 = dma.hbm_to_vmem [thread:$0]  %s49_s23, 128, %s51_s26, [#allocation6], %s2121_s10, %s2121_s10, %s2122_s11  }
  0x10   :  { %s89_s2 = sshll.u32 %s2715_s6, 4  ;;  %s2128_s9 = smov [#allocation10]   ;;  %s90_s2 = int_to_ptr.hbm [resolvable:$true] %s89_s2 }
  0x11   :  { %s76_s12 = sshll.u32 %s2128_s9, 4  ;;  %s2129_s13 = smov [#allocation11]   ;;  %s77_s12 = int_to_ptr.vmem [resolvable:$true] %s76_s12 }
  0x12   :  { %82 = dma.hbm_to_vmem [thread:$0]  %s75_s0, 1024, %s77_s12, [#allocation9], %s2124_s19, %s2124_s19, %s2125_s20  }
  0x13   :  { %s91_s14 = sshll.u32 %s2129_s13, 4  ;;  %s92_s14 = int_to_ptr.vmem [resolvable:$true] %s91_s14 }
  0x14   :  { %97 = dma.hbm_to_vmem [thread:$0]  %s90_s2, 1024, %s92_s14, [#allocation12], %s2124_s19, %s2124_s19, %s2125_s20  }
  0x15   :  { %2110 = dma.done.wait [#allocation3], 512  }
  0x16   :  { %2111 = vsyncadd [#allocation3], 4294966784 }
  0x17   :  { %2112 = dma.done.wait [#allocation6], 256  }
  0x18   :  { %2113 = vsyncadd [#allocation6], 4294967040 }
  0x19   :  { %2114 = dma.done.wait [#allocation9], 2048  }
  0x1a   :  { %2115 = vsyncadd [#allocation9], 4294965248 }
  0x1b   :  { %2116 = dma.done.wait [#allocation12], 1024  }
  0x1c   :  { %2117 = vsyncadd [#allocation12], 4294966272  ;;  %v134_v0 = vld [vmem:[#allocation8 + $0x18] sm:$0xff]  ;;  %v133_v1 = vld [vmem:[#allocation8 + $0x10] sm:$0xff]  ;;  %vm2718_vm0 = vcmask 261120   ;;  %vm307_vm1 = vcmask 1041409  }
  0x1d   :  { %v2199_v2 = vld [vmem:[#allocation10 + $0x18] sm:$0xff]  ;;  %164 = vmatpush.msra.mxu0 %v134_v0  ;;  %v2202_v3 = vld [vmem:[#allocation10 + $0x10] sm:$0xff]  ;;  %v132_v4 = vld [vmem:[#allocation8 + $0x8] sm:$0xff]  ;;  %vm310_vm2 = vcmask 1042434   ;;  %s2130_s11 = smov 32   ;;  %s2131_s18 = smov [#allocation13]  }
  0x1e   :  { %202 = vmatpush.msra.mxu1 %v2199_v2  ;;  %v2204_v5 = vld [vmem:[#allocation10 + $0x8] sm:$0xff]  ;;  %v124_v6 = vld [vmem:[#allocation2] sm:$0xff]  ;;  %366 = vmatpush.msra.mxu2 %v2199_v2  ;;  %v125_v8 = vld [vmem:[#allocation2 + $0x8] sm:$0xff]  ;;  %s1645_s1 = sshll.u32 %s2131_s18, 4  ;;  %s1647_s21 = sshll.u32 %s2717_s8, 4  ;;  %s1646_s1 = int_to_ptr.vmem [resolvable:$true] %s1645_s1  ;;  %s1648_s21 = int_to_ptr.hbm [resolvable:$true] %s1647_s21 }
  0x1f   :  { %523 = vmatpush.msra.mxu3 %v2199_v2  ;;  %165 = vmatpush.msra.mxu0 %v133_v1  ;;  %v1470_v7 = vrot.slane %v124_v6, 7  ;;  %v126_v9 = vld [vmem:[#allocation2 + $0x10] sm:$0xff]  ;;  %v1471_v12 = vrot.slane %v125_v8, 6  ;;  %v185_v14 = vld [vmem:[#allocation5] sm:$0xf]  ;;  %v127_v17 = vld [vmem:[#allocation2 + $0x18] sm:$0xff]  ;;  %v128_v1 = vlaneseq }
  0x20   :  { %203 = vmatpush.msra.mxu1 %v2202_v3  ;;  %v131_v10 = vld [vmem:[#allocation8] sm:$0xff]  ;;  %v1473_v13 = vrot.slane %v126_v9, 5  ;;  %367 = vmatpush.msra.mxu2 %v2202_v3  ;;  %v1722_v18 = vld [vmem:[%s2714_s5] ss:$0 sm:$0xff] }
  0x21   :  { %v2209_v11 = vld [vmem:[#allocation10] sm:$0xff]  ;;  %524 = vmatpush.msra.mxu3 %v2202_v3  ;;  %166 = vmatpush.msra.mxu0 %v132_v4  ;;  %v1472_v15 = vsel %vm307_vm1, %v1471_v12, %v1470_v7 }
  0x22   :  { %204 = vmatpush.msra.mxu1 %v2204_v5  ;;  %368 = vmatpush.msra.mxu2 %v2204_v5  ;;  %v2219_v16 = vsel %vm310_vm2, %v1473_v13, %v1472_v15 }
  0x23   :  { %525 = vmatpush.msra.mxu3 %v2204_v5  ;;  %167 = vmatpush.msra.mxu0 %v131_v10 }
  0x24   :  { %205 = vmatpush.msra.mxu1 %v2209_v11  ;;  %1660 = vmatmul.msk.f32.vlgmr.msra.gmra.mxu0 %vm2718_vm0, %v124_v6 }
  0x25   :  { %1664 = vmatmul.msk.f32.vlgmr.msra.gmra.mxu1 %vm2718_vm0, %v185_v14  ;;  %369 = vmatpush.msra.mxu2 %v2209_v11 }
  0x26   :  { %526 = vmatpush.msra.mxu3 %v2209_v11  ;;  %680 = vmatpush.msrb.mxu1 %v2199_v2 }
  0x27   :  { %837 = vmatpush.msrb.mxu2 %v2199_v2 }
  0x28   :  { %997 = vmatpush.msrb.mxu3 %v2199_v2  ;;  %681 = vmatpush.msrb.mxu1 %v2202_v3 }
  0x29   :  { %838 = vmatpush.msrb.mxu2 %v2202_v3 }
  0x2a   :  { %998 = vmatpush.msrb.mxu3 %v2202_v3  ;;  %682 = vmatpush.msrb.mxu1 %v2204_v5 }
  0x2b   :  { %839 = vmatpush.msrb.mxu2 %v2204_v5 }
  0x2c   :  { %999 = vmatpush.msrb.mxu3 %v2204_v5  ;;  %1661 = vmatmul.msk.f32.gmra.mxu0 %vm2718_vm0, %v125_v8 }
  0x2d   :  { %683 = vmatpush.msrb.mxu1 %v2209_v11  ;;  %840 = vmatpush.msrb.mxu2 %v2209_v11 }
  0x2e   :  { %1000 = vmatpush.msrb.mxu3 %v2209_v11 }
  0x2f   :  { %1157 = vmatpush.msra.mxu1 %v2199_v2 }
  0x31   :  { %1158 = vmatpush.msra.mxu1 %v2202_v3 }
  0x33   :  { %1159 = vmatpush.msra.mxu1 %v2204_v5 }
  0x34   :  { %1662 = vmatmul.msk.f32.gmra.mxu0 %vm2718_vm0, %v126_v9 }
  0x35   :  { %1160 = vmatpush.msra.mxu1 %v2209_v11 }
  0x3c   :  { %1663 = vmatmul.msk.f32.gmra.mxu0 %vm2718_vm0, %v127_v17 }
  0xa1   :  { %v169_v19 = vpop.f32.mrf.mxu0 }
  0xa2   :  { %v2247_v20 = vadd.f32 %v1722_v18, %v169_v19  ;;  %v207_v21 = vpop.f32.mrf.mxu1 }
  0xa3   :  { %v211_v23 = vrot.slane %v207_v21, 1  ;;  %v212_v29 = vrot.slane %v207_v21, 2  ;;  %v213_v39 = vrot.slane %v207_v21, 3 }
  0xa4   :  { %v218_v22 = vadd.f32 %v207_v21, %v2247_v20 }
  0xa6   :  { %v1665_v26 = vmul.f32 -1.442695, %v218_v22 }
  0xa8   :  { %1725 = vpow2.f32 %v1665_v26 }
  0xa9   :  { %v172_v24 = vpop.f32.mrf.mxu0 }
  0xaa   :  { %v2250_v25 = vadd.f32 %v1722_v18, %v172_v24 }
  0xac   :  { %v219_v27 = vadd.f32 %v211_v23, %v2250_v25 }
  0xae   :  { %v1666_v28 = vmul.f32 -1.442695, %v219_v27  ;;  %v1726_v33 = vpop.eup %1725 }
  0xaf   :  { %v2256_v37 = vadd.f32 1.0, %v1726_v33 }
  0xb0   :  { %1727 = vpow2.f32 %v1666_v28 }
  0xb1   :  { %v175_v30 = vpop.f32.mrf.mxu0  ;;  %vm243_vm8 = vweird.f32 %v2256_v37  ;;  %v247_v10 = vand.u32 2147483647, %v2256_v37  ;;  %v249_v21 = vand.u32 2147483648, %v2256_v37 }
  0xb2   :  { %v2253_v31 = vadd.f32 %v1722_v18, %v175_v30 }
  0xb4   :  { %v220_v32 = vadd.f32 %v212_v29, %v2253_v31  ;;  %v2291_v29 = vand.u32 127, %v128_v1 }
  0xb6   :  { %v1728_v34 = vpop.eup %1727  ;;  %v1667_v35 = vmul.f32 -1.442695, %v220_v32 }
  0xb7   :  { %v235_v36 = vadd.f32 1.0, %v1728_v34 }
  0xb8   :  { %1729 = vpow2.f32 %v1667_v35 }
  0xb9   :  { %v178_v38 = vpop.f32.mrf.mxu0  ;;  %1731 = vrcp.f32 %v235_v36  ;;  %vm258_vm4 = vweird.f32 %v235_v36  ;;  %v264_v59 = vand.u32 2147483648, %v235_v36  ;;  %v262_v61 = vand.u32 2147483647, %v235_v36 }
  0xba   :  { %v2258_v40 = vadd.f32 %v1722_v18, %v178_v38  ;;  %1733 = vrcp.f32 %v2256_v37  ;;  %v250_v38 = vor.u32 1.1754944e-38, %v249_v21 }
  0xbb   :  { %v265_v12 = vor.u32 1.1754944e-38, %v264_v59  ;;  %vm263_vm11 = vcmp.eq.f32.partialorder %v262_v61, 8.507059e+37 }
  0xbc   :  { %v221_v41 = vadd.f32 %v213_v39, %v2258_v40 }
  0xbe   :  { %v1730_v42 = vpop.eup %1729  ;;  %v1668_v43 = vmul.f32 -1.442695, %v221_v41 }
  0xbf   :  { %v1732_v44 = vpop.eup %1731  ;;  %v236_v45 = vadd.f32 1.0, %v1730_v42 }
  0xc0   :  { %1735 = vpow2.f32 %v1668_v43  ;;  %v254_v46 = vmul.f32 %v1732_v44, %v235_v36  ;;  %v2262_v47 = vpop.eup %1733  ;;  %vm259_vm3 = vweird.f32 %v1732_v44 }
  0xc1   :  { %1737 = vrcp.f32 %v236_v45  ;;  %v239_v50 = vmul.f32 %v2262_v47, %v2256_v37  ;;  %v279_v63 = vand.u32 2147483648, %v236_v45  ;;  %vm2270_vm6 = vmor %vm258_vm4, %vm259_vm3  ;;  %vm273_vm7 = vweird.f32 %v236_v45 }
  0xc2   :  { %v255_v48 = vsub.f32 1.0, %v254_v46  ;;  %v277_v6 = vand.u32 2147483647, %v236_v45  ;;  %vm244_vm10 = vweird.f32 %v2262_v47  ;;  %vm248_vm4 = vcmp.eq.f32.partialorder %v247_v10, 8.507059e+37 }
  0xc3   :  { %v240_v55 = vsub.f32 1.0, %v239_v50  ;;  %v280_v17 = vor.u32 1.1754944e-38, %v279_v63  ;;  %vm2297_vm14 = vmor %vm243_vm8, %vm244_vm10 }
  0xc4   :  { %v256_v53 = vmul.f32 %v1732_v44, %v255_v48  ;;  %vm278_vm12 = vcmp.eq.f32.partialorder %v277_v6, 8.507059e+37 }
  0xc5   :  { %v241_v60 = vmul.f32 %v2262_v47, %v240_v55 }
  0xc6   :  { %v1736_v49 = vpop.eup %1735  ;;  %v257_v57 = vadd.f32 %v1732_v44, %v256_v53 }
  0xc7   :  { %v1738_v51 = vpop.eup %1737  ;;  %v2266_v52 = vadd.f32 1.0, %v1736_v49  ;;  %v242_v15 = vadd.f32 %v2262_v47, %v241_v60 }
  0xc8   :  { %v269_v54 = vmul.f32 %v1738_v51, %v236_v45  ;;  %vm274_vm5 = vweird.f32 %v1738_v51  ;;  %v261_v7 = vsel %vm2270_vm6, %v1732_v44, %v257_v57  ;;  %vm2720_vm6 = vcmask 1043459  }
  0xc9   :  { %1739 = vrcp.f32 %v2266_v52  ;;  %vm2278_vm9 = vmor %vm273_vm7, %vm274_vm5  ;;  %v294_v23 = vand.u32 2147483648, %v2266_v52  ;;  %v246_v34 = vsel %vm2297_vm14, %v2262_v47, %v242_v15  ;;  %vm288_vm15 = vweird.f32 %v2266_v52 }
  0xca   :  { %v270_v56 = vsub.f32 1.0, %v269_v54  ;;  %1741 = vtanh.f32 %v219_v27  ;;  %v292_v27 = vand.u32 2147483647, %v2266_v52  ;;  %v251_v44 = vsel %vm248_vm4, %v250_v38, %v246_v34  ;;  %v186_v54 = vld [vmem:[#allocation7] sm:$0xf] }
  0xcb   :  { %1743 = vtanh.f32 %v220_v32  ;;  %v295_v39 = vor.u32 1.1754944e-38, %v294_v23  ;;  %vm2719_vm7 = vcmp.lt.s32.totalorder %v2291_v29, 96 }
  0xcc   :  { %v271_v58 = vmul.f32 %v1738_v51, %v270_v56  ;;  %1745 = vtanh.f32 %v221_v41  ;;  %vm293_vm5 = vcmp.eq.f32.partialorder %v292_v27, 8.507059e+37 }
  0xcd   :  { %1747 = vtanh.f32 %v218_v22  ;;  %v266_v22 = vsel %vm263_vm11, %v265_v12, %v261_v7 }
  0xce   :  { %v272_v62 = vadd.f32 %v1738_v51, %v271_v58  ;;  %v306_v36 = vrot.slane %v266_v22, 7 }
  0xcf   :  { %v1740_v0 = vpop.eup %1739 }
  0xd0   :  { %v284_v9 = vmul.f32 %v1740_v0, %v2266_v52  ;;  %v276_v13 = vsel %vm2278_vm9, %v1738_v51, %v272_v62  ;;  %v1742_v14 = vpop.eup %1741  ;;  %vm289_vm13 = vweird.f32 %v1740_v0  ;;  %v308_v46 = vsel %vm307_vm1, %v306_v36, %v251_v44 }
  0xd1   :  { %v1744_v19 = vpop.eup %1743  ;;  %v281_v24 = vsel %vm278_vm12, %v280_v17, %v276_v13  ;;  %v320_v32 = vrot.slane %v1742_v14, 7  ;;  %vm290_vm3 = vmor %vm288_vm15, %vm289_vm13 }
  0xd2   :  { %v285_v18 = vsub.f32 1.0, %v284_v9  ;;  %v1746_v28 = vpop.eup %1745  ;;  %v309_v41 = vrot.slane %v281_v24, 6  ;;  %v322_v42 = vrot.slane %v1744_v19, 6 }
  0xd3   :  { %v1748_v33 = vpop.eup %1747  ;;  %v324_v43 = vrot.slane %v1746_v28, 5 }
  0xd4   :  { %v286_v26 = vmul.f32 %v1740_v0, %v285_v18  ;;  %v321_v48 = vsel %vm307_vm1, %v320_v32, %v1748_v33  ;;  %v311_v49 = vsel %vm310_vm2, %v309_v41, %v308_v46 }
  0xd5   :  { %v323_v50 = vsel %vm310_vm2, %v322_v42, %v321_v48 }
  0xd6   :  { %v287_v35 = vadd.f32 %v1740_v0, %v286_v26  ;;  %v325_v52 = vsel %vm2720_vm6, %v324_v43, %v323_v50 }
  0xd8   :  { %v291_v37 = vsel %vm290_vm3, %v1740_v0, %v287_v35 }
  0xd9   :  { %v296_v45 = vsel %vm293_vm5, %v295_v39, %v291_v37 }
  0xda   :  { %v312_v47 = vrot.slane %v296_v45, 5 }
  0xdc   :  { %v314_v51 = vsel %vm2720_vm6, %v312_v47, %v311_v49 }
  0xdd   :  { %v327_v53 = vsel %vm2719_vm7, %v314_v51, %v325_v52 }
  0xde   :  { %334 = vrot.lane.b32.xlu0 %v327_v53, %s2130_s11 }
  0xe6   :  { %329 = vrot.lane.b32.xlu0 %v186_v54, %s2130_s11 }
 0x150   :  { %v335_v55 = vpop.permute.xlu0 %334 }
 0x151   :  { %v337_v56 = vmul.f32 %v335_v55, %v327_v53 }
 0x153   :  { %339 = vrot.lane.b32.xlu1 %v337_v56, %s2130_s11 }
 0x158   :  { %v330_v57 = vpop.permute.xlu0 %329 }
 0x159   :  { %v332_v58 = vmul.f32 %v330_v57, %v327_v53 }
 0x1c5   :  { %v340_v59 = vpop.permute.xlu1 %339 }
 0x1c6   :  { %v2317_v60 = vadd.f32 %v340_v59, %v332_v58 }
 0x1c8   :  { %1749 = vtanh.f32 %v2317_v60 }
 0x1ce   :  { %v1750_v61 = vpop.eup %1749 }
 0x1cf   :  { %345 = vrot.lane.b32.xlu1 %v1750_v61, %s2130_s11 }
 0x241   :  { %v346_v62 = vpop.permute.xlu1 %345 }
 0x242   :  { %v348_v63 = vmul.f32 %v346_v62, %v327_v53 }
 0x244   :  { %350 = vrot.lane.b32.xlu2 %v348_v63, %s2121_s10 }
 0x29e   :  { %v351_v0 = vpop.permute.xlu2 %350 }
 0x29f   :  { %1669 = vmatmul.msk.f32.vlgmr.msra.gmra.mxu2 %vm2718_vm0, %v351_v0 }
 0x2a0   :  { %1317 = vmatpush.msra.mxu2 %v2199_v2 }
 0x2a2   :  { %1318 = vmatpush.msra.mxu2 %v2202_v3 }
 0x2a4   :  { %1319 = vmatpush.msra.mxu2 %v2204_v5 }
 0x2a6   :  { %1320 = vmatpush.msra.mxu2 %v2209_v11 }
 0x322   :  { %v371_v1 = vpop.f32.mrf.mxu2 }
 0x323   :  { %v375_v4 = vrot.slane %v371_v1, 7  ;;  %v376_v6 = vrot.slane %v371_v1, 1  ;;  %v377_v7 = vrot.slane %v371_v1, 2  ;;  %v383_v8 = vadd.f32 %v371_v1, %v2250_v25 }
 0x325   :  { %v382_v9 = vadd.f32 %v375_v4, %v2247_v20  ;;  %v384_v10 = vadd.f32 %v376_v6, %v2253_v31  ;;  %v385_v12 = vadd.f32 %v377_v7, %v2258_v40  ;;  %v1671_v13 = vmul.f32 -1.442695, %v383_v8 }
 0x327   :  { %v1670_v2 = vmul.f32 -1.442695, %v382_v9  ;;  %1751 = vpow2.f32 %v1671_v13  ;;  %v1672_v3 = vmul.f32 -1.442695, %v384_v10  ;;  %v1673_v14 = vmul.f32 -1.442695, %v385_v12 }
 0x329   :  { %1753 = vpow2.f32 %v1670_v2 }
 0x32a   :  { %1755 = vpow2.f32 %v1672_v3 }
 0x32b   :  { %1757 = vpow2.f32 %v1673_v14 }
 0x32c   :  { %1759 = vtanh.f32 %v382_v9 }
 0x32d   :  { %v1752_v5 = vpop.eup %1751  ;;  %1761 = vtanh.f32 %v383_v8 }
 0x32e   :  { %v399_v11 = vadd.f32 1.0, %v1752_v5 }
 0x32f   :  { %v1754_v15 = vpop.eup %1753 }
 0x330   :  { %v1756_v17 = vpop.eup %1755  ;;  %v398_v18 = vadd.f32 1.0, %v1754_v15  ;;  %1763 = vrcp.f32 %v399_v11  ;;  %v426_v33 = vand.u32 2147483647, %v399_v11  ;;  %v428_v35 = vand.u32 2147483648, %v399_v11 }
 0x331   :  { %v1758_v19 = vpop.eup %1757  ;;  %v2331_v21 = vadd.f32 1.0, %v1756_v17  ;;  %1765 = vtanh.f32 %v384_v10  ;;  %vm422_vm8 = vweird.f32 %v399_v11 }
 0x332   :  { %v1760_v22 = vpop.eup %1759  ;;  %v2333_v23 = vadd.f32 1.0, %v1758_v19  ;;  %1767 = vrcp.f32 %v398_v18  ;;  %v411_v32 = vand.u32 2147483647, %v398_v18  ;;  %vm407_vm9 = vweird.f32 %v398_v18 }
 0x333   :  { %1769 = vrcp.f32 %v2331_v21  ;;  %v1762_v24 = vpop.eup %1761  ;;  %v481_v26 = vrot.slane %v1760_v22, 1  ;;  %v413_v43 = vand.u32 2147483648, %v398_v18  ;;  %vm2346_vm11 = vcmp.eq.f32.partialorder %v426_v33, 8.507059e+37 }
 0x334   :  { %1771 = vrcp.f32 %v2333_v23  ;;  %vm2342_vm10 = vcmp.eq.f32.partialorder %v411_v32, 8.507059e+37  ;;  %v429_v50 = vor.u32 1.1754944e-38, %v428_v35  ;;  %v443_v52 = vand.u32 2147483648, %v2331_v21 }
 0x335   :  { %1773 = vtanh.f32 %v385_v12  ;;  %v482_v41 = vsel %vm307_vm1, %v1762_v24, %v481_v26  ;;  %v441_v58 = vand.u32 2147483647, %v2331_v21  ;;  %v458_v59 = vand.u32 2147483648, %v2333_v23 }
 0x336   :  { %v1764_v27 = vpop.eup %1763  ;;  %v456_v0 = vand.u32 2147483647, %v2333_v23  ;;  %v414_v1 = vor.u32 1.1754944e-38, %v413_v43  ;;  %vm437_vm5 = vweird.f32 %v2331_v21  ;;  %vm452_vm0 = vweird.f32 %v2333_v23 }
 0x337   :  { %v2337_v28 = vpop.eup %1765  ;;  %v418_v30 = vmul.f32 %v1764_v27, %v399_v11  ;;  %vm423_vm12 = vweird.f32 %v1764_v27  ;;  %v444_v8 = vor.u32 1.1754944e-38, %v443_v52  ;;  %v459_v13 = vor.u32 1.1754944e-38, %v458_v59 }
 0x338   :  { %v1768_v34 = vpop.eup %1767  ;;  %v483_v37 = vrot.slane %v2337_v28, 7  ;;  %vm2355_vm15 = vmor %vm422_vm8, %vm423_vm12  ;;  %vm442_vm12 = vcmp.eq.f32.partialorder %v441_v58, 8.507059e+37 }
 0x339   :  { %v1770_v36 = vpop.eup %1769  ;;  %v403_v38 = vmul.f32 %v1768_v34, %v398_v18  ;;  %v419_v39 = vsub.f32 1.0, %v418_v30  ;;  %vm408_vm13 = vweird.f32 %v1768_v34 }
 0x33a   :  { %v1772_v42 = vpop.eup %1771  ;;  %v433_v44 = vmul.f32 %v1770_v36, %v2331_v21  ;;  %vm438_vm14 = vweird.f32 %v1770_v36  ;;  %vm409_vm4 = vmor %vm407_vm9, %vm408_vm13  ;;  %vm457_vm13 = vcmp.eq.f32.partialorder %v456_v0, 8.507059e+37  ;;  %v484_v17 = vsel %vm310_vm2, %v483_v37, %v482_v41 }
 0x33b   :  { %v404_v45 = vsub.f32 1.0, %v403_v38  ;;  %v420_v47 = vmul.f32 %v1764_v27, %v419_v39  ;;  %v448_v49 = vmul.f32 %v1772_v42, %v2333_v23  ;;  %v1774_v56 = vpop.eup %1773  ;;  %vm453_vm3 = vweird.f32 %v1772_v42  ;;  %vm439_vm8 = vmor %vm437_vm5, %vm438_vm14 }
 0x33c   :  { %v434_v51 = vsub.f32 1.0, %v433_v44  ;;  %vm454_vm9 = vmor %vm452_vm0, %vm453_vm3  ;;  %v485_v21 = vrot.slane %v1774_v56, 6  ;;  %vm2733_vm0 = vcmask 261120  }
 0x33d   :  { %v405_v53 = vmul.f32 %v1768_v34, %v404_v45  ;;  %v421_v54 = vadd.f32 %v1764_v27, %v420_v47  ;;  %v449_v55 = vsub.f32 1.0, %v448_v49 }
 0x33e   :  { %v435_v57 = vmul.f32 %v1770_v36, %v434_v51  ;;  %v486_v24 = vsel %vm2720_vm6, %v485_v21, %v484_v17 }
 0x33f   :  { %v406_v61 = vadd.f32 %v1768_v34, %v405_v53  ;;  %v450_v63 = vmul.f32 %v1772_v42, %v449_v55  ;;  %v425_v7 = vsel %vm2355_vm15, %v1764_v27, %v421_v54 }
 0x340   :  { %v436_v4 = vadd.f32 %v1770_v36, %v435_v57  ;;  %v430_v5 = vsel %vm2346_vm11, %v429_v50, %v425_v7 }
 0x341   :  { %v410_v6 = vsel %vm409_vm4, %v1768_v34, %v406_v61  ;;  %v451_v9 = vadd.f32 %v1772_v42, %v450_v63 }
 0x342   :  { %v415_v10 = vsel %vm2342_vm10, %v414_v1, %v410_v6  ;;  %v440_v12 = vsel %vm439_vm8, %v1770_v36, %v436_v4 }
 0x343   :  { %v445_v2 = vsel %vm442_vm12, %v444_v8, %v440_v12  ;;  %v455_v3 = vsel %vm454_vm9, %v1772_v42, %v451_v9  ;;  %v470_v14 = vrot.slane %v415_v10, 1 }
 0x344   :  { %v460_v11 = vsel %vm457_vm13, %v459_v13, %v455_v3  ;;  %v472_v15 = vrot.slane %v445_v2, 7 }
 0x345   :  { %v471_v18 = vsel %vm307_vm1, %v430_v5, %v470_v14  ;;  %v474_v19 = vrot.slane %v460_v11, 6 }
 0x346   :  { %v473_v22 = vsel %vm310_vm2, %v472_v15, %v471_v18 }
 0x347   :  { %v475_v23 = vsel %vm2720_vm6, %v474_v19, %v473_v22 }
 0x348   :  { %v488_v26 = vsel %vm2719_vm7, %v475_v23, %v486_v24 }
 0x349   :  { %491 = vrot.lane.b32.xlu2 %v488_v26, %s2130_s11  ;;  %v489_v30 = vmul.f32 %v488_v26, %v2317_v60 }
 0x3a3   :  { %v492_v27 = vpop.permute.xlu2 %491 }
 0x3a4   :  { %v494_v28 = vmul.f32 %v492_v27, %v488_v26 }
 0x3a6   :  { %496 = vrot.lane.b32.xlu0 %v494_v28, %s2130_s11 }
 0x418   :  { %v497_v32 = vpop.permute.xlu0 %496 }
 0x419   :  { %v2381_v33 = vadd.f32 %v497_v32, %v489_v30 }
 0x41b   :  { %1775 = vtanh.f32 %v2381_v33 }
 0x421   :  { %v1776_v34 = vpop.eup %1775 }
 0x422   :  { %502 = vrot.lane.b32.xlu1 %v1776_v34, %s2130_s11 }
 0x494   :  { %v503_v35 = vpop.permute.xlu1 %502 }
 0x495   :  { %v505_v36 = vmul.f32 %v503_v35, %v488_v26 }
 0x497   :  { %507 = vrot.lane.b32.xlu2 %v505_v36, %s2121_s10 }
 0x4f1   :  { %v508_v38 = vpop.permute.xlu2 %507 }
 0x4f2   :  { %1674 = vmatmul.msk.f32.vlgmr.msra.gmra.mxu3 %vm2733_vm0, %v508_v38 }
 0x575   :  { %v528_v39 = vpop.f32.mrf.mxu3 }
 0x576   :  { %v532_v41 = vrot.slane %v528_v39, 6  ;;  %v533_v42 = vrot.slane %v528_v39, 7  ;;  %v534_v37 = vrot.slane %v528_v39, 1  ;;  %v541_v60 = vadd.f32 %v528_v39, %v2253_v31 }
 0x578   :  { %v539_v43 = vadd.f32 %v532_v41, %v2247_v20  ;;  %v540_v44 = vadd.f32 %v533_v42, %v2250_v25  ;;  %v542_v45 = vadd.f32 %v534_v37, %v2258_v40  ;;  %v1677_v46 = vmul.f32 -1.442695, %v541_v60 }
 0x57a   :  { %v1675_v47 = vmul.f32 -1.442695, %v539_v43  ;;  %v1676_v48 = vmul.f32 -1.442695, %v540_v44  ;;  %1777 = vpow2.f32 %v1677_v46  ;;  %v1678_v49 = vmul.f32 -1.442695, %v542_v45 }
 0x57c   :  { %1779 = vpow2.f32 %v1675_v47 }
 0x57d   :  { %1781 = vpow2.f32 %v1676_v48 }
 0x57e   :  { %1783 = vpow2.f32 %v1678_v49 }
 0x57f   :  { %1785 = vtanh.f32 %v539_v43 }
 0x580   :  { %v1778_v50 = vpop.eup %1777 }
 0x581   :  { %v2391_v51 = vadd.f32 1.0, %v1778_v50 }
 0x582   :  { %v1780_v52 = vpop.eup %1779 }
 0x583   :  { %v1782_v53 = vpop.eup %1781  ;;  %v555_v54 = vadd.f32 1.0, %v1780_v52  ;;  %1787 = vrcp.f32 %v2391_v51  ;;  %vm594_vm10 = vweird.f32 %v2391_v51  ;;  %v598_v8 = vand.u32 2147483647, %v2391_v51 }
 0x584   :  { %v1784_v55 = vpop.eup %1783  ;;  %v556_v56 = vadd.f32 1.0, %v1782_v53  ;;  %1789 = vtanh.f32 %v540_v44  ;;  %v600_v9 = vand.u32 2147483648, %v2391_v51 }
 0x585   :  { %v558_v57 = vadd.f32 1.0, %v1784_v55  ;;  %1791 = vrcp.f32 %v555_v54  ;;  %v1786_v58 = vpop.eup %1785  ;;  %v568_v1 = vand.u32 2147483647, %v555_v54  ;;  %vm564_vm11 = vweird.f32 %v555_v54 }
 0x586   :  { %1793 = vrcp.f32 %v556_v56  ;;  %v638_v0 = vrot.slane %v1786_v58, 2  ;;  %v570_v2 = vand.u32 2147483648, %v555_v54  ;;  %vm579_vm14 = vweird.f32 %v556_v56 }
 0x587   :  { %1795 = vrcp.f32 %v558_v57  ;;  %vm2402_vm15 = vcmp.eq.f32.partialorder %v568_v1, 8.507059e+37  ;;  %v583_v17 = vand.u32 2147483647, %v556_v56  ;;  %v585_v21 = vand.u32 2147483648, %v556_v56 }
 0x588   :  { %1797 = vtanh.f32 %v541_v60  ;;  %v613_v26 = vand.u32 2147483647, %v558_v57  ;;  %v615_v27 = vand.u32 2147483648, %v558_v57  ;;  %v571_v35 = vor.u32 1.1754944e-38, %v570_v2 }
 0x589   :  { %v2394_v59 = vpop.eup %1787  ;;  %1799 = vtanh.f32 %v542_v45  ;;  %vm584_vm13 = vcmp.eq.f32.partialorder %v583_v17, 8.507059e+37  ;;  %vm609_vm0 = vweird.f32 %v558_v57  ;;  %v586_v39 = vor.u32 1.1754944e-38, %v585_v21 }
 0x58a   :  { %v1790_v61 = vpop.eup %1789  ;;  %v590_v62 = vmul.f32 %v2394_v59, %v2391_v51  ;;  %vm595_vm3 = vweird.f32 %v2394_v59  ;;  %v616_v43 = vor.u32 1.1754944e-38, %v615_v27  ;;  %v601_v48 = vor.u32 1.1754944e-38, %v600_v9 }
 0x58b   :  { %v1792_v63 = vpop.eup %1791  ;;  %v639_v13 = vrot.slane %v1790_v61, 1  ;;  %vm2410_vm8 = vmor %vm594_vm10, %vm595_vm3  ;;  %vm614_vm3 = vcmp.eq.f32.partialorder %v613_v26, 8.507059e+37 }
 0x58c   :  { %v1794_v4 = vpop.eup %1793  ;;  %v560_v6 = vmul.f32 %v1792_v63, %v555_v54  ;;  %v591_v7 = vsub.f32 1.0, %v590_v62  ;;  %vm565_vm4 = vweird.f32 %v1792_v63 }
 0x58d   :  { %v1796_v10 = vpop.eup %1795  ;;  %v575_v12 = vmul.f32 %v1794_v4, %v556_v56  ;;  %vm580_vm5 = vweird.f32 %v1794_v4  ;;  %vm566_vm9 = vmor %vm564_vm11, %vm565_vm4  ;;  %v640_v42 = vsel %vm307_vm1, %v639_v13, %v638_v0  ;;  %vm599_vm11 = vcmp.eq.f32.partialorder %v598_v8, 8.507059e+37 }
 0x58e   :  { %v561_v3 = vsub.f32 1.0, %v560_v6  ;;  %v592_v14 = vmul.f32 %v2394_v59, %v591_v7  ;;  %v605_v5 = vmul.f32 %v1796_v10, %v558_v57  ;;  %v1798_v18 = vpop.eup %1797  ;;  %vm610_vm12 = vweird.f32 %v1796_v10  ;;  %vm581_vm7 = vmor %vm579_vm14, %vm580_vm5 }
 0x58f   :  { %v576_v11 = vsub.f32 1.0, %v575_v12  ;;  %v1800_v23 = vpop.eup %1799  ;;  %vm611_vm10 = vmor %vm609_vm0, %vm610_vm12  ;;  %v641_v51 = vsel %vm310_vm2, %v1798_v18, %v640_v42  ;;  %vm2739_vm14 = vcmask 261120  }
 0x590   :  { %v562_v19 = vmul.f32 %v1792_v63, %v561_v3  ;;  %v606_v22 = vsub.f32 1.0, %v605_v5  ;;  %v593_v30 = vadd.f32 %v2394_v59, %v592_v14  ;;  %v642_v55 = vrot.slane %v1800_v23, 7 }
 0x591   :  { %v577_v24 = vmul.f32 %v1794_v4, %v576_v11 }
 0x592   :  { %v563_v28 = vadd.f32 %v1792_v63, %v562_v19  ;;  %v607_v34 = vmul.f32 %v1796_v10, %v606_v22  ;;  %v597_v45 = vsel %vm2410_vm8, %v2394_v59, %v593_v30  ;;  %v643_v58 = vsel %vm2720_vm6, %v642_v55, %v641_v51 }
 0x593   :  { %v578_v36 = vadd.f32 %v1794_v4, %v577_v24  ;;  %v602_v52 = vsel %vm599_vm11, %v601_v48, %v597_v45 }
 0x594   :  { %v567_v38 = vsel %vm566_vm9, %v1792_v63, %v563_v28  ;;  %v608_v41 = vadd.f32 %v1796_v10, %v607_v34 }
 0x595   :  { %v572_v37 = vsel %vm2402_vm15, %v571_v35, %v567_v38  ;;  %v582_v60 = vsel %vm581_vm7, %v1794_v4, %v578_v36  ;;  %vm2738_vm7 = vcmp.lt.s32.totalorder %v2291_v29, 96 }
 0x596   :  { %v587_v44 = vsel %vm584_vm13, %v586_v39, %v582_v60  ;;  %v612_v46 = vsel %vm611_vm10, %v1796_v10, %v608_v41  ;;  %v627_v47 = vrot.slane %v572_v37, 2 }
 0x597   :  { %v617_v49 = vsel %vm614_vm3, %v616_v43, %v612_v46  ;;  %v628_v50 = vrot.slane %v587_v44, 1 }
 0x598   :  { %v631_v54 = vrot.slane %v617_v49, 7 }
 0x599   :  { %v629_v53 = vsel %vm307_vm1, %v628_v50, %v627_v47 }
 0x59a   :  { %v630_v56 = vsel %vm310_vm2, %v602_v52, %v629_v53 }
 0x59b   :  { %v632_v57 = vsel %vm2720_vm6, %v631_v54, %v630_v56 }
 0x59c   :  { %v645_v59 = vsel %vm2738_vm7, %v632_v57, %v643_v58 }
 0x59d   :  { %648 = vrot.lane.b32.xlu0 %v645_v59, %s2130_s11  ;;  %v646_v63 = vmul.f32 %v645_v59, %v2381_v33 }
 0x60f   :  { %v649_v61 = vpop.permute.xlu0 %648 }
 0x610   :  { %v651_v62 = vmul.f32 %v649_v61, %v645_v59 }
 0x612   :  { %653 = vrot.lane.b32.xlu1 %v651_v62, %s2130_s11 }
 0x684   :  { %v654_v0 = vpop.permute.xlu1 %653 }
 0x685   :  { %v2432_v1 = vadd.f32 %v654_v0, %v646_v63 }
 0x687   :  { %1801 = vtanh.f32 %v2432_v1 }
 0x68d   :  { %v1802_v4 = vpop.eup %1801 }
 0x68e   :  { %659 = vrot.lane.b32.xlu2 %v1802_v4, %s2130_s11 }
 0x6e8   :  { %v660_v6 = vpop.permute.xlu2 %659 }
 0x6e9   :  { %v662_v7 = vmul.f32 %v660_v6, %v645_v59 }
 0x6eb   :  { %664 = vrot.lane.b32.xlu0 %v662_v7, %s2121_s10 }
 0x75d   :  { %v665_v8 = vpop.permute.xlu0 %664 }
 0x75e   :  { %1679 = vmatmul.msk.f32.vlgmr.msrb.gmra.mxu1 %vm2739_vm14, %v665_v8 }
 0x7db   :  { %v685_v9 = vpop.f32.mrf.mxu1 }
 0x7dc   :  { %v689_v10 = vrot.slane %v685_v9, 5  ;;  %v690_v12 = vrot.slane %v685_v9, 6  ;;  %v691_v13 = vrot.slane %v685_v9, 7  ;;  %v699_v33 = vadd.f32 %v685_v9, %v2258_v40 }
 0x7de   :  { %v696_v2 = vadd.f32 %v689_v10, %v2247_v20  ;;  %v697_v3 = vadd.f32 %v690_v12, %v2250_v25  ;;  %v698_v14 = vadd.f32 %v691_v13, %v2253_v31  ;;  %v1683_v5 = vmul.f32 -1.442695, %v699_v33 }
 0x7e0   :  { %v1680_v11 = vmul.f32 -1.442695, %v696_v2  ;;  %v1681_v15 = vmul.f32 -1.442695, %v697_v3  ;;  %v1682_v17 = vmul.f32 -1.442695, %v698_v14  ;;  %1803 = vpow2.f32 %v1683_v5 }
 0x7e2   :  { %1805 = vpow2.f32 %v1680_v11 }
 0x7e3   :  { %1807 = vpow2.f32 %v1681_v15 }
 0x7e4   :  { %1809 = vpow2.f32 %v1682_v17 }
 0x7e5   :  { %1811 = vtanh.f32 %v696_v2 }
 0x7e6   :  { %v1804_v18 = vpop.eup %1803  ;;  %1813 = vtanh.f32 %v697_v3 }
 0x7e7   :  { %v2442_v19 = vadd.f32 1.0, %v1804_v18 }
 0x7e8   :  { %v1806_v21 = vpop.eup %1805 }
 0x7e9   :  { %v1808_v22 = vpop.eup %1807  ;;  %v712_v23 = vadd.f32 1.0, %v1806_v21  ;;  %1815 = vrcp.f32 %v2442_v19  ;;  %v770_v60 = vand.u32 2147483647, %v2442_v19  ;;  %v772_v43 = vand.u32 2147483648, %v2442_v19 }
 0x7ea   :  { %v1810_v24 = vpop.eup %1809  ;;  %v713_v26 = vadd.f32 1.0, %v1808_v22  ;;  %1817 = vtanh.f32 %v698_v14  ;;  %vm766_vm4 = vweird.f32 %v2442_v19 }
 0x7eb   :  { %v2445_v27 = vadd.f32 1.0, %v1810_v24  ;;  %1819 = vrcp.f32 %v712_v23  ;;  %v1812_v28 = vpop.eup %1811  ;;  %v725_v39 = vand.u32 2147483647, %v712_v23  ;;  %vm721_vm15 = vweird.f32 %v712_v23 }
 0x7ec   :  { %1821 = vrcp.f32 %v713_v26  ;;  %v1814_v30 = vpop.eup %1813  ;;  %v795_v38 = vrot.slane %v1812_v28, 3  ;;  %v727_v47 = vand.u32 2147483648, %v712_v23  ;;  %vm736_vm5 = vweird.f32 %v713_v26 }
 0x7ed   :  { %1823 = vrcp.f32 %v2445_v27  ;;  %v796_v46 = vrot.slane %v1814_v30, 2  ;;  %vm2459_vm8 = vcmp.eq.f32.partialorder %v725_v39, 8.507059e+37  ;;  %v740_v53 = vand.u32 2147483647, %v713_v26 }
 0x7ee   :  { %1825 = vtanh.f32 %v699_v33  ;;  %v742_v56 = vand.u32 2147483648, %v713_v26  ;;  %v728_v59 = vor.u32 1.1754944e-38, %v727_v47  ;;  %v757_v62 = vand.u32 2147483648, %v2445_v27 }
 0x7ef   :  { %v2448_v32 = vpop.eup %1815  ;;  %v755_v4 = vand.u32 2147483647, %v2445_v27  ;;  %vm751_vm10 = vweird.f32 %v2445_v27  ;;  %vm741_vm7 = vcmp.eq.f32.partialorder %v740_v53, 8.507059e+37  ;;  %v797_v2 = vsel %vm307_vm1, %v796_v46, %v795_v38 }
 0x7f0   :  { %v2450_v34 = vpop.eup %1817  ;;  %v762_v35 = vmul.f32 %v2448_v32, %v2442_v19  ;;  %vm767_vm3 = vweird.f32 %v2448_v32  ;;  %v743_v9 = vor.u32 1.1754944e-38, %v742_v56  ;;  %v758_v33 = vor.u32 1.1754944e-38, %v757_v62 }
 0x7f1   :  { %v1820_v36 = vpop.eup %1819  ;;  %v798_v49 = vrot.slane %v2450_v34, 1  ;;  %v773_v18 = vor.u32 1.1754944e-38, %v772_v43 }
 0x7f2   :  { %v1822_v41 = vpop.eup %1821  ;;  %v717_v42 = vmul.f32 %v1820_v36, %v712_v23  ;;  %v763_v37 = vsub.f32 1.0, %v762_v35  ;;  %vm722_vm12 = vweird.f32 %v1820_v36 }
 0x7f3   :  { %v1824_v44 = vpop.eup %1823  ;;  %v732_v45 = vmul.f32 %v1822_v41, %v713_v26  ;;  %vm737_vm9 = vweird.f32 %v1822_v41  ;;  %vm723_vm0 = vmor %vm721_vm15, %vm722_vm12  ;;  %vm756_vm15 = vcmp.eq.f32.partialorder %v755_v4, 8.507059e+37  ;;  %v799_v22 = vsel %vm310_vm2, %v798_v49, %v797_v2 }
 0x7f4   :  { %v718_v48 = vsub.f32 1.0, %v717_v42  ;;  %v747_v50 = vmul.f32 %v1824_v44, %v2445_v27  ;;  %v764_v54 = vmul.f32 %v2448_v32, %v763_v37  ;;  %v1826_v58 = vpop.eup %1825  ;;  %vm752_vm13 = vweird.f32 %v1824_v44  ;;  %vm738_vm11 = vmor %vm736_vm5, %vm737_vm9 }
 0x7f5   :  { %v733_v51 = vsub.f32 1.0, %v732_v45  ;;  %vm753_vm14 = vmor %vm751_vm10, %vm752_vm13  ;;  %vm771_vm5 = vcmp.eq.f32.partialorder %v770_v60, 8.507059e+37  ;;  %v800_v19 = vsel %vm2720_vm6, %v1826_v58, %v799_v22 }
 0x7f6   :  { %v719_v55 = vmul.f32 %v1820_v36, %v718_v48  ;;  %v748_v57 = vsub.f32 1.0, %v747_v50  ;;  %v765_v7 = vadd.f32 %v2448_v32, %v764_v54  ;;  %vm768_vm12 = vmor %vm766_vm4, %vm767_vm3  ;;  %vm2742_vm4 = vcmp.lt.s32.totalorder %v2291_v29, 96 }
 0x7f7   :  { %v734_v61 = vmul.f32 %v1822_v41, %v733_v51 }
 0x7f8   :  { %v720_v63 = vadd.f32 %v1820_v36, %v719_v55  ;;  %v749_v0 = vmul.f32 %v1824_v44, %v748_v57  ;;  %v769_v15 = vsel %vm768_vm12, %v2448_v32, %v765_v7 }
 0x7f9   :  { %v735_v6 = vadd.f32 %v1822_v41, %v734_v61  ;;  %v774_v24 = vsel %vm771_vm5, %v773_v18, %v769_v15 }
 0x7fa   :  { %v724_v8 = vsel %vm723_vm0, %v1820_v36, %v720_v63  ;;  %v750_v10 = vadd.f32 %v1824_v44, %v749_v0 }
 0x7fb   :  { %v729_v12 = vsel %vm2459_vm8, %v728_v59, %v724_v8  ;;  %v739_v13 = vsel %vm738_vm11, %v1822_v41, %v735_v6  ;;  %vm2743_vm8 = vcmask 261120  }
 0x7fc   :  { %v744_v3 = vsel %vm741_vm7, %v743_v9, %v739_v13  ;;  %v754_v14 = vsel %vm753_vm14, %v1824_v44, %v750_v10  ;;  %v784_v5 = vrot.slane %v729_v12, 3 }
 0x7fd   :  { %v759_v11 = vsel %vm756_vm15, %v758_v33, %v754_v14  ;;  %v785_v17 = vrot.slane %v744_v3, 2 }
 0x7fe   :  { %v787_v21 = vrot.slane %v759_v11, 1 }
 0x7ff   :  { %v786_v23 = vsel %vm307_vm1, %v785_v17, %v784_v5 }
 0x800   :  { %v788_v26 = vsel %vm310_vm2, %v787_v21, %v786_v23 }
 0x801   :  { %v789_v27 = vsel %vm2720_vm6, %v774_v24, %v788_v26 }
 0x802   :  { %v802_v28 = vsel %vm2742_vm4, %v789_v27, %v800_v19 }
 0x803   :  { %805 = vrot.lane.b32.xlu1 %v802_v28, %s2130_s11  ;;  %v803_v34 = vmul.f32 %v802_v28, %v2432_v1 }
 0x875   :  { %v806_v30 = vpop.permute.xlu1 %805 }
 0x876   :  { %v808_v32 = vmul.f32 %v806_v30, %v802_v28 }
 0x878   :  { %810 = vrot.lane.b32.xlu2 %v808_v32, %s2130_s11 }
 0x8d2   :  { %v811_v35 = vpop.permute.xlu2 %810 }
 0x8d3   :  { %v2487_v36 = vadd.f32 %v811_v35, %v803_v34 }
 0x8d5   :  { %1827 = vtanh.f32 %v2487_v36 }
 0x8db   :  { %v1828_v38 = vpop.eup %1827 }
 0x8dc   :  { %816 = vrot.lane.b32.xlu0 %v1828_v38, %s2130_s11 }
 0x94e   :  { %v817_v39 = vpop.permute.xlu0 %816 }
 0x94f   :  { %v819_v41 = vmul.f32 %v817_v39, %v802_v28 }
 0x951   :  { %821 = vrot.lane.b32.xlu1 %v819_v41, %s2121_s10 }
 0x9c3   :  { %v822_v42 = vpop.permute.xlu1 %821 }
 0x9c4   :  { %1684 = vmatmul.msk.f32.vlgmr.msrb.gmra.mxu2 %vm2743_vm8, %v822_v42 }
 0xa47   :  { %v842_v37 = vpop.f32.mrf.mxu2 }
 0xa48   :  { %v846_v60 = vrot.slane %v842_v37, 4  ;;  %v847_v43 = vrot.slane %v842_v37, 5  ;;  %v848_v44 = vrot.slane %v842_v37, 6  ;;  %v849_v1 = vrot.slane %v842_v37, 7 }
 0xa4a   :  { %v854_v45 = vadd.f32 %v846_v60, %v2247_v20  ;;  %v855_v46 = vadd.f32 %v847_v43, %v2250_v25  ;;  %v856_v47 = vadd.f32 %v848_v44, %v2253_v31  ;;  %v857_v48 = vadd.f32 %v849_v1, %v2258_v40 }
 0xa4c   :  { %v1685_v49 = vmul.f32 -1.442695, %v854_v45  ;;  %v1686_v50 = vmul.f32 -1.442695, %v855_v46  ;;  %v1687_v51 = vmul.f32 -1.442695, %v856_v47  ;;  %1829 = vtanh.f32 %v854_v45 }
 0xa4d   :  { %v1688_v52 = vmul.f32 -1.442695, %v857_v48  ;;  %1831 = vtanh.f32 %v855_v46 }
 0xa4e   :  { %1833 = vpow2.f32 %v1685_v49 }
 0xa4f   :  { %1835 = vpow2.f32 %v1686_v50 }
 0xa50   :  { %1837 = vpow2.f32 %v1687_v51 }
 0xa51   :  { %1839 = vpow2.f32 %v1688_v52 }
 0xa52   :  { %v1830_v53 = vpop.eup %1829  ;;  %1841 = vtanh.f32 %v856_v47 }
 0xa53   :  { %v1832_v54 = vpop.eup %1831  ;;  %v954_v0 = vrot.slane %v1830_v53, 4 }
 0xa54   :  { %v1834_v55 = vpop.eup %1833  ;;  %v955_v4 = vrot.slane %v1832_v54, 3 }
 0xa55   :  { %v1836_v56 = vpop.eup %1835  ;;  %v870_v57 = vadd.f32 1.0, %v1834_v55 }
 0xa56   :  { %v1838_v58 = vpop.eup %1837  ;;  %v871_v59 = vadd.f32 1.0, %v1836_v56  ;;  %v956_v33 = vsel %vm307_vm1, %v955_v4, %v954_v0 }
 0xa57   :  { %v1840_v61 = vpop.eup %1839  ;;  %v872_v62 = vadd.f32 1.0, %v1838_v58  ;;  %1843 = vrcp.f32 %v870_v57  ;;  %v883_v6 = vand.u32 2147483647, %v870_v57  ;;  %v885_v7 = vand.u32 2147483648, %v870_v57 }
 0xa58   :  { %v2497_v63 = vadd.f32 1.0, %v1840_v61  ;;  %1845 = vrcp.f32 %v871_v59  ;;  %v2500_v8 = vpop.eup %1841  ;;  %v898_v10 = vand.u32 2147483647, %v871_v59  ;;  %vm879_vm9 = vweird.f32 %v870_v57 }
 0xa59   :  { %1847 = vrcp.f32 %v872_v62  ;;  %vm894_vm13 = vweird.f32 %v871_v59  ;;  %v957_v14 = vrot.slane %v2500_v8, 2  ;;  %vm2504_vm0 = vcmp.eq.f32.partialorder %v883_v6, 8.507059e+37 }
 0xa5a   :  { %1849 = vrcp.f32 %v2497_v63  ;;  %v886_v11 = vor.u32 1.1754944e-38, %v885_v7  ;;  %v900_v18 = vand.u32 2147483648, %v871_v59  ;;  %vm909_vm10 = vweird.f32 %v872_v62 }
 0xa5b   :  { %1851 = vtanh.f32 %v857_v48  ;;  %vm2508_vm3 = vcmp.eq.f32.partialorder %v898_v10, 8.507059e+37  ;;  %v913_v24 = vand.u32 2147483647, %v872_v62  ;;  %v915_v28 = vand.u32 2147483648, %v872_v62 }
 0xa5c   :  { %vm924_vm14 = vweird.f32 %v2497_v63  ;;  %v930_v39 = vand.u32 2147483648, %v2497_v63  ;;  %v928_v37 = vand.u32 2147483647, %v2497_v63  ;;  %v901_v43 = vor.u32 1.1754944e-38, %v900_v18 }
 0xa5d   :  { %v1844_v9 = vpop.eup %1843  ;;  %vm914_vm8 = vcmp.eq.f32.partialorder %v913_v24, 8.507059e+37  ;;  %v916_v46 = vor.u32 1.1754944e-38, %v915_v28 }
 0xa5e   :  { %v1846_v12 = vpop.eup %1845  ;;  %v875_v13 = vmul.f32 %v1844_v9, %v870_v57  ;;  %vm880_vm11 = vweird.f32 %v1844_v9  ;;  %v931_v50 = vor.u32 1.1754944e-38, %v930_v39  ;;  %v958_v57 = vsel %vm310_vm2, %v957_v14, %v956_v33 }
 0xa5f   :  { %v1848_v2 = vpop.eup %1847  ;;  %v890_v3 = vmul.f32 %v1846_v12, %v871_v59  ;;  %vm895_vm7 = vweird.f32 %v1846_v12  ;;  %vm881_vm12 = vmor %vm879_vm9, %vm880_vm11 }
 0xa60   :  { %v1850_v15 = vpop.eup %1849  ;;  %v876_v17 = vsub.f32 1.0, %v875_v13  ;;  %v905_v21 = vmul.f32 %v1848_v2, %v872_v62  ;;  %vm910_vm15 = vweird.f32 %v1848_v2  ;;  %vm896_vm4 = vmor %vm894_vm13, %vm895_vm7  ;;  %vm929_vm13 = vcmp.eq.f32.partialorder %v928_v37, 8.507059e+37 }
 0xa61   :  { %v891_v22 = vsub.f32 1.0, %v890_v3  ;;  %v920_v26 = vmul.f32 %v1850_v15, %v2497_v63  ;;  %v1852_v30 = vpop.eup %1851  ;;  %vm925_vm5 = vweird.f32 %v1850_v15  ;;  %vm911_vm6 = vmor %vm909_vm10, %vm910_vm15  ;;  %vm2750_vm10 = vcmp.lt.s32.totalorder %v2291_v29, 96 }
 0xa62   :  { %v877_v27 = vmul.f32 %v1844_v9, %v876_v17  ;;  %v906_v19 = vsub.f32 1.0, %v905_v21  ;;  %vm926_vm9 = vmor %vm924_vm14, %vm925_vm5  ;;  %v959_v61 = vrot.slane %v1852_v30, 1 }
 0xa63   :  { %v892_v32 = vmul.f32 %v1846_v12, %v891_v22  ;;  %v921_v34 = vsub.f32 1.0, %v920_v26 }
 0xa64   :  { %v878_v35 = vadd.f32 %v1844_v9, %v877_v27  ;;  %v907_v38 = vmul.f32 %v1848_v2, %v906_v19 }
 0xa65   :  { %v893_v41 = vadd.f32 %v1846_v12, %v892_v32  ;;  %v922_v42 = vmul.f32 %v1850_v15, %v921_v34 }
 0xa66   :  { %v882_v60 = vsel %vm881_vm12, %v1844_v9, %v878_v35  ;;  %v908_v44 = vadd.f32 %v1848_v2, %v907_v38 }
 0xa67   :  { %v887_v1 = vsel %vm2504_vm0, %v886_v11, %v882_v60  ;;  %v897_v45 = vsel %vm896_vm4, %v1846_v12, %v893_v41  ;;  %v923_v47 = vadd.f32 %v1850_v15, %v922_v42 }
 0xa68   :  { %v902_v48 = vsel %vm2508_vm3, %v901_v43, %v897_v45  ;;  %v912_v49 = vsel %vm911_vm6, %v1848_v2, %v908_v44  ;;  %v942_v51 = vrot.slane %v887_v1, 4  ;;  %vm2748_vm6 = vcmask 1043459  }
 0xa69   :  { %v917_v52 = vsel %vm914_vm8, %v916_v46, %v912_v49  ;;  %v927_v53 = vsel %vm926_vm9, %v1850_v15, %v923_v47  ;;  %v943_v54 = vrot.slane %v902_v48, 3  ;;  %vm2749_vm0 = vmmov %vm2748_vm6  ;;  %vm2751_vm3 = vcmask 261120  }
 0xa6a   :  { %v932_v55 = vsel %vm929_vm13, %v931_v50, %v927_v53  ;;  %v945_v56 = vrot.slane %v917_v52, 2  ;;  %v960_v63 = vsel %vm2749_vm0, %v959_v61, %v958_v57 }
 0xa6b   :  { %v944_v58 = vsel %vm307_vm1, %v943_v54, %v942_v51  ;;  %v947_v59 = vrot.slane %v932_v55, 1 }
 0xa6c   :  { %v946_v62 = vsel %vm310_vm2, %v945_v56, %v944_v58 }
 0xa6d   :  { %v948_v0 = vsel %vm2748_vm6, %v947_v59, %v946_v62 }
 0xa6e   :  { %v962_v4 = vsel %vm2750_vm10, %v948_v0, %v960_v63 }
 0xa6f   :  { %965 = vrot.lane.b32.xlu2 %v962_v4, %s2130_s11  ;;  %v963_v8 = vmul.f32 %v962_v4, %v2487_v36 }
 0xac9   :  { %v966_v6 = vpop.permute.xlu2 %965 }
 0xaca   :  { %v968_v7 = vmul.f32 %v966_v6, %v962_v4 }
 0xacc   :  { %970 = vrot.lane.b32.xlu0 %v968_v7, %s2130_s11 }
 0xb3e   :  { %v971_v9 = vpop.permute.xlu0 %970 }
 0xb3f   :  { %v2535_v10 = vadd.f32 %v971_v9, %v963_v8 }
 0xb41   :  { %1853 = vtanh.f32 %v2535_v10 }
 0xb47   :  { %v1854_v12 = vpop.eup %1853 }
 0xb48   :  { %976 = vrot.lane.b32.xlu1 %v1854_v12, %s2130_s11 }
 0xbba   :  { %v977_v13 = vpop.permute.xlu1 %976 }
 0xbbb   :  { %v979_v33 = vmul.f32 %v977_v13, %v962_v4 }
 0xbbd   :  { %981 = vrot.lane.b32.xlu2 %v979_v33, %s2121_s10 }
 0xc17   :  { %v982_v2 = vpop.permute.xlu2 %981 }
 0xc18   :  { %1689 = vmatmul.msk.f32.vlgmr.msrb.gmra.mxu3 %vm2751_vm3, %v982_v2 }
 0xc9b   :  { %v1002_v3 = vpop.f32.mrf.mxu3 }
 0xc9c   :  { %v1006_v14 = vrot.slane %v1002_v3, 3  ;;  %v1007_v5 = vrot.slane %v1002_v3, 4  ;;  %v1008_v11 = vrot.slane %v1002_v3, 5  ;;  %v1009_v36 = vrot.slane %v1002_v3, 6 }
 0xc9e   :  { %v1014_v15 = vadd.f32 %v1006_v14, %v2247_v20  ;;  %v1015_v17 = vadd.f32 %v1007_v5, %v2250_v25  ;;  %v1016_v18 = vadd.f32 %v1008_v11, %v2253_v31  ;;  %v1017_v21 = vadd.f32 %v1009_v36, %v2258_v40 }
 0xca0   :  { %v1690_v22 = vmul.f32 -1.442695, %v1014_v15  ;;  %v1691_v23 = vmul.f32 -1.442695, %v1015_v17  ;;  %v1692_v24 = vmul.f32 -1.442695, %v1016_v18  ;;  %1855 = vtanh.f32 %v1014_v15 }
 0xca1   :  { %v1693_v26 = vmul.f32 -1.442695, %v1017_v21  ;;  %1857 = vtanh.f32 %v1015_v17 }
 0xca2   :  { %1859 = vpow2.f32 %v1690_v22 }
 0xca3   :  { %1861 = vpow2.f32 %v1691_v23 }
 0xca4   :  { %1863 = vpow2.f32 %v1692_v24 }
 0xca5   :  { %1865 = vpow2.f32 %v1693_v26 }
 0xca6   :  { %v1856_v27 = vpop.eup %1855  ;;  %1867 = vtanh.f32 %v1016_v18 }
 0xca7   :  { %v1858_v19 = vpop.eup %1857  ;;  %v1114_v42 = vrot.slane %v1856_v27, 5 }
 0xca8   :  { %v1860_v28 = vpop.eup %1859  ;;  %v1115_v37 = vrot.slane %v1858_v19, 4 }
 0xca9   :  { %v1862_v30 = vpop.eup %1861  ;;  %v1030_v32 = vadd.f32 1.0, %v1860_v28 }
 0xcaa   :  { %v1864_v34 = vpop.eup %1863  ;;  %v1031_v35 = vadd.f32 1.0, %v1862_v30  ;;  %v1116_v48 = vsel %vm307_vm1, %v1115_v37, %v1114_v42 }
 0xcab   :  { %v1866_v38 = vpop.eup %1865  ;;  %v1032_v39 = vadd.f32 1.0, %v1864_v34  ;;  %1869 = vrcp.f32 %v1030_v32  ;;  %v1043_v60 = vand.u32 2147483647, %v1030_v32  ;;  %v1045_v43 = vand.u32 2147483648, %v1030_v32 }
 0xcac   :  { %v2545_v41 = vadd.f32 1.0, %v1866_v38  ;;  %1871 = vrcp.f32 %v1031_v35  ;;  %v2548_v44 = vpop.eup %1867  ;;  %v1058_v45 = vand.u32 2147483647, %v1031_v35  ;;  %vm1039_vm11 = vweird.f32 %v1030_v32 }
 0xcad   :  { %1873 = vrcp.f32 %v1032_v39  ;;  %vm1054_vm7 = vweird.f32 %v1031_v35  ;;  %v1117_v51 = vrot.slane %v2548_v44, 3  ;;  %vm2552_vm14 = vcmp.eq.f32.partialorder %v1043_v60, 8.507059e+37 }
 0xcae   :  { %1875 = vrcp.f32 %v2545_v41  ;;  %v1046_v53 = vor.u32 1.1754944e-38, %v1045_v43  ;;  %v1060_v56 = vand.u32 2147483648, %v1031_v35  ;;  %vm1069_vm15 = vweird.f32 %v1032_v39 }
 0xcaf   :  { %1877 = vtanh.f32 %v1017_v21  ;;  %vm2556_vm12 = vcmp.eq.f32.partialorder %v1058_v45, 8.507059e+37  ;;  %v1073_v61 = vand.u32 2147483647, %v1032_v39  ;;  %v1075_v4 = vand.u32 2147483648, %v1032_v39 }
 0xcb0   :  { %vm1084_vm8 = vweird.f32 %v2545_v41  ;;  %v1090_v13 = vand.u32 2147483648, %v2545_v41  ;;  %v1088_v3 = vand.u32 2147483647, %v2545_v41  ;;  %v1061_v5 = vor.u32 1.1754944e-38, %v1060_v56 }
 0xcb1   :  { %v1870_v1 = vpop.eup %1869  ;;  %vm1074_vm10 = vcmp.eq.f32.partialorder %v1073_v61, 8.507059e+37  ;;  %v1076_v17 = vor.u32 1.1754944e-38, %v1075_v4 }
 0xcb2   :  { %v1872_v46 = vpop.eup %1871  ;;  %v1035_v47 = vmul.f32 %v1870_v1, %v1030_v32  ;;  %vm1040_vm5 = vweird.f32 %v1870_v1  ;;  %v1091_v23 = vor.u32 1.1754944e-38, %v1090_v13  ;;  %v1118_v32 = vsel %vm310_vm2, %v1117_v51, %v1116_v48 }
 0xcb3   :  { %v1874_v49 = vpop.eup %1873  ;;  %v1050_v50 = vmul.f32 %v1872_v46, %v1031_v35  ;;  %vm1055_vm4 = vweird.f32 %v1872_v46  ;;  %vm1041_vm13 = vmor %vm1039_vm11, %vm1040_vm5  ;;  %vm2759_vm5 = vcmask 261120  }
 0xcb4   :  { %v1876_v54 = vpop.eup %1875  ;;  %v1036_v55 = vsub.f32 1.0, %v1035_v47  ;;  %v1065_v57 = vmul.f32 %v1874_v49, %v1032_v39  ;;  %vm1070_vm9 = vweird.f32 %v1874_v49  ;;  %vm1056_vm0 = vmor %vm1054_vm7, %vm1055_vm4  ;;  %vm1089_vm7 = vcmp.eq.f32.partialorder %v1088_v3, 8.507059e+37 }
 0xcb5   :  { %v1051_v58 = vsub.f32 1.0, %v1050_v50  ;;  %v1080_v62 = vmul.f32 %v1876_v54, %v2545_v41  ;;  %v1878_v6 = vpop.eup %1877  ;;  %vm1085_vm6 = vweird.f32 %v1876_v54  ;;  %vm1071_vm3 = vmor %vm1069_vm15, %vm1070_vm9 }
 0xcb6   :  { %v1037_v0 = vmul.f32 %v1870_v1, %v1036_v55  ;;  %v1066_v63 = vsub.f32 1.0, %v1065_v57  ;;  %vm1086_vm11 = vmor %vm1084_vm8, %vm1085_vm6  ;;  %v1119_v38 = vrot.slane %v1878_v6, 2 }
 0xcb7   :  { %v1052_v7 = vmul.f32 %v1872_v46, %v1051_v58  ;;  %v1081_v8 = vsub.f32 1.0, %v1080_v62 }
 0xcb8   :  { %v1038_v9 = vadd.f32 %v1870_v1, %v1037_v0  ;;  %v1067_v12 = vmul.f32 %v1874_v49, %v1066_v63 }
 0xcb9   :  { %v1053_v33 = vadd.f32 %v1872_v46, %v1052_v7  ;;  %v1082_v2 = vmul.f32 %v1876_v54, %v1081_v8 }
 0xcba   :  { %v1042_v14 = vsel %vm1041_vm13, %v1870_v1, %v1038_v9  ;;  %v1068_v11 = vadd.f32 %v1874_v49, %v1067_v12 }
 0xcbb   :  { %v1047_v36 = vsel %vm2552_vm14, %v1046_v53, %v1042_v14  ;;  %v1057_v15 = vsel %vm1056_vm0, %v1872_v46, %v1053_v33  ;;  %v1083_v18 = vadd.f32 %v1876_v54, %v1082_v2  ;;  %vm2756_vm14 = vcmask 1043459  }
 0xcbc   :  { %v1062_v21 = vsel %vm2556_vm12, %v1061_v5, %v1057_v15  ;;  %v1072_v22 = vsel %vm1071_vm3, %v1874_v49, %v1068_v11  ;;  %v1102_v24 = vrot.slane %v1047_v36, 5  ;;  %vm2757_vm15 = vmmov %vm2756_vm14  ;;  %vm2758_vm12 = vcmp.lt.s32.totalorder %v2291_v29, 96 }
 0xcbd   :  { %v1077_v26 = vsel %vm1074_vm10, %v1076_v17, %v1072_v22  ;;  %v1087_v27 = vsel %vm1086_vm11, %v1876_v54, %v1083_v18  ;;  %v1103_v19 = vrot.slane %v1062_v21, 4  ;;  %v1120_v41 = vsel %vm2757_vm15, %v1119_v38, %v1118_v32 }
 0xcbe   :  { %v1092_v28 = vsel %vm1089_vm7, %v1091_v23, %v1087_v27  ;;  %v1105_v30 = vrot.slane %v1077_v26, 3  ;;  %v1500_v26 = vld [vmem:[#allocation5 + $0x4] sm:$0xf] }
 0xcbf   :  { %v1104_v34 = vsel %vm307_vm1, %v1103_v19, %v1102_v24  ;;  %v1107_v35 = vrot.slane %v1092_v28, 2 }
 0xcc0   :  { %v1106_v39 = vsel %vm310_vm2, %v1105_v30, %v1104_v34 }
 0xcc1   :  { %v1108_v42 = vsel %vm2756_vm14, %v1107_v35, %v1106_v39 }
 0xcc2   :  { %v1122_v37 = vsel %vm2758_vm12, %v1108_v42, %v1120_v41 }
 0xcc3   :  { %1125 = vrot.lane.b32.xlu0 %v1122_v37, %s2130_s11  ;;  %v1123_v44 = vmul.f32 %v1122_v37, %v2535_v10 }
 0xd35   :  { %v1126_v60 = vpop.permute.xlu0 %1125 }
 0xd36   :  { %v1128_v43 = vmul.f32 %v1126_v60, %v1122_v37 }
 0xd38   :  { %1130 = vrot.lane.b32.xlu1 %v1128_v43, %s2130_s11 }
 0xdaa   :  { %v1131_v1 = vpop.permute.xlu1 %1130 }
 0xdab   :  { %v2583_v45 = vadd.f32 %v1131_v1, %v1123_v44 }
 0xdad   :  { %1879 = vtanh.f32 %v2583_v45 }
 0xdb3   :  { %v1880_v46 = vpop.eup %1879 }
 0xdb4   :  { %1136 = vrot.lane.b32.xlu2 %v1880_v46, %s2130_s11 }
 0xe0e   :  { %v1137_v47 = vpop.permute.xlu2 %1136 }
 0xe0f   :  { %v1139_v48 = vmul.f32 %v1137_v47, %v1122_v37 }
 0xe11   :  { %1141 = vrot.lane.b32.xlu0 %v1139_v48, %s2121_s10 }
 0xe83   :  { %v1142_v49 = vpop.permute.xlu0 %1141 }
 0xe84   :  { %1694 = vmatmul.msk.f32.vlgmr.msra.gmra.mxu1 %vm2759_vm5, %v1142_v49 }
 0xf01   :  { %v1162_v50 = vpop.f32.mrf.mxu1 }
 0xf02   :  { %v1166_v51 = vrot.slane %v1162_v50, 2  ;;  %v1167_v52 = vrot.slane %v1162_v50, 3  ;;  %v1168_v53 = vrot.slane %v1162_v50, 4  ;;  %v1169_v10 = vrot.slane %v1162_v50, 5 }
 0xf04   :  { %v1174_v54 = vadd.f32 %v1166_v51, %v2247_v20  ;;  %v1175_v55 = vadd.f32 %v1167_v52, %v2250_v25  ;;  %v1176_v56 = vadd.f32 %v1168_v53, %v2253_v31  ;;  %v1177_v57 = vadd.f32 %v1169_v10, %v2258_v40 }
 0xf06   :  { %v1695_v58 = vmul.f32 -1.442695, %v1174_v54  ;;  %v1696_v59 = vmul.f32 -1.442695, %v1175_v55  ;;  %v1697_v61 = vmul.f32 -1.442695, %v1176_v56  ;;  %1881 = vtanh.f32 %v1174_v54 }
 0xf07   :  { %v1698_v62 = vmul.f32 -1.442695, %v1177_v57  ;;  %1883 = vtanh.f32 %v1175_v55 }
 0xf08   :  { %1885 = vpow2.f32 %v1695_v58 }
 0xf09   :  { %1887 = vpow2.f32 %v1696_v59 }
 0xf0a   :  { %1889 = vpow2.f32 %v1697_v61 }
 0xf0b   :  { %1891 = vpow2.f32 %v1698_v62 }
 0xf0c   :  { %v1882_v0 = vpop.eup %1881  ;;  %1893 = vtanh.f32 %v1176_v56 }
 0xf0d   :  { %v1884_v63 = vpop.eup %1883  ;;  %v1274_v2 = vrot.slane %v1882_v0, 6 }
 0xf0e   :  { %v1886_v4 = vpop.eup %1885  ;;  %v1275_v3 = vrot.slane %v1884_v63, 5 }
 0xf0f   :  { %v1888_v6 = vpop.eup %1887  ;;  %v1190_v7 = vadd.f32 1.0, %v1886_v4 }
 0xf10   :  { %v1890_v8 = vpop.eup %1889  ;;  %v1191_v9 = vadd.f32 1.0, %v1888_v6  ;;  %v1276_v21 = vsel %vm307_vm1, %v1275_v3, %v1274_v2 }
 0xf11   :  { %v1892_v12 = vpop.eup %1891  ;;  %v1192_v13 = vadd.f32 1.0, %v1890_v8  ;;  %1895 = vrcp.f32 %v1190_v7  ;;  %v1203_v14 = vand.u32 2147483647, %v1190_v7  ;;  %v1205_v5 = vand.u32 2147483648, %v1190_v7 }
 0xf12   :  { %v2593_v33 = vadd.f32 1.0, %v1892_v12  ;;  %1897 = vrcp.f32 %v1191_v9  ;;  %v2596_v11 = vpop.eup %1893  ;;  %v1218_v15 = vand.u32 2147483647, %v1191_v9  ;;  %vm1199_vm4 = vweird.f32 %v1190_v7 }
 0xf13   :  { %1899 = vrcp.f32 %v1192_v13  ;;  %vm1214_vm8 = vweird.f32 %v1191_v9  ;;  %v1277_v24 = vrot.slane %v2596_v11, 4  ;;  %vm2600_vm9 = vcmp.eq.f32.partialorder %v1203_v14, 8.507059e+37  ;;  %v1941_v14 = vld [vmem:[#allocation2 + $0x18] sm:$0xff]  ;;  %v1464_v11 = vld [vmem:[#allocation8 + $0x38] sm:$0xff] }
 0xf14   :  { %1901 = vrcp.f32 %v2593_v33  ;;  %v1206_v27 = vor.u32 1.1754944e-38, %v1205_v5  ;;  %v1220_v30 = vand.u32 2147483648, %v1191_v9  ;;  %vm1229_vm13 = vweird.f32 %v1192_v13  ;;  %1491 = vmatpush.msra.mxu3 %v1464_v11 }
 0xf15   :  { %1903 = vtanh.f32 %v1177_v57  ;;  %vm2604_vm6 = vcmp.eq.f32.partialorder %v1218_v15, 8.507059e+37  ;;  %v1233_v38 = vand.u32 2147483647, %v1192_v13  ;;  %v1235_v37 = vand.u32 2147483648, %v1192_v13 }
 0xf16   :  { %vm1244_vm3 = vweird.f32 %v2593_v33  ;;  %v1250_v47 = vand.u32 2147483648, %v2593_v33  ;;  %v1248_v50 = vand.u32 2147483647, %v2593_v33  ;;  %v1221_v52 = vor.u32 1.1754944e-38, %v1220_v30 }
 0xf17   :  { %v1896_v36 = vpop.eup %1895  ;;  %vm1234_vm12 = vcmp.eq.f32.partialorder %v1233_v38, 8.507059e+37  ;;  %v1236_v55 = vor.u32 1.1754944e-38, %v1235_v37  ;;  %v1475_v5 = vrot.slane %v1941_v14, 4 }
 0xf18   :  { %v1898_v17 = vpop.eup %1897  ;;  %v1195_v18 = vmul.f32 %v1896_v36, %v1190_v7  ;;  %vm1200_vm0 = vweird.f32 %v1896_v36  ;;  %v1251_v59 = vor.u32 1.1754944e-38, %v1250_v47  ;;  %v1278_v7 = vsel %vm310_vm2, %v1277_v24, %v1276_v21  ;;  %v1462_v21 = vld [vmem:[#allocation8 + $0x28] sm:$0xff]  ;;  %v1504_v24 = vld [vmem:[#allocation10 + $0x20] sm:$0xff] }
 0xf19   :  { %v1900_v22 = vpop.eup %1899  ;;  %v1210_v23 = vmul.f32 %v1898_v17, %v1191_v9  ;;  %vm1215_vm10 = vweird.f32 %v1898_v17  ;;  %vm1201_vm7 = vmor %vm1199_vm4, %vm1200_vm0 }
 0xf1a   :  { %v1902_v19 = vpop.eup %1901  ;;  %v1196_v28 = vsub.f32 1.0, %v1195_v18  ;;  %v1225_v32 = vmul.f32 %v1900_v22, %v1192_v13  ;;  %vm1230_vm11 = vweird.f32 %v1900_v22  ;;  %vm1216_vm15 = vmor %vm1214_vm8, %vm1215_vm10  ;;  %vm1249_vm8 = vcmp.eq.f32.partialorder %v1248_v50, 8.507059e+37  ;;  %v1506_v18 = vld [vmem:[#allocation10 + $0x30] sm:$0xff] }
 0xf1b   :  { %v1211_v34 = vsub.f32 1.0, %v1210_v23  ;;  %v1240_v39 = vmul.f32 %v1902_v19, %v2593_v33  ;;  %v1904_v60 = vpop.eup %1903  ;;  %vm1245_vm14 = vweird.f32 %v1902_v19  ;;  %vm1231_vm5 = vmor %vm1229_vm13, %vm1230_vm11  ;;  %v1461_v23 = vld [vmem:[#allocation8 + $0x20] sm:$0xff]  ;;  %vm2768_vm10 = vcmask 261120  }
 0xf1c   :  { %v1197_v42 = vmul.f32 %v1896_v36, %v1196_v28  ;;  %v1226_v41 = vsub.f32 1.0, %v1225_v32  ;;  %vm1246_vm4 = vmor %vm1244_vm3, %vm1245_vm14  ;;  %v1279_v12 = vrot.slane %v1904_v60, 3 }
 0xf1d   :  { %v1212_v43 = vmul.f32 %v1898_v17, %v1211_v34  ;;  %v1241_v44 = vsub.f32 1.0, %v1240_v39  ;;  %vm2769_vm3 = vmmov %vm2768_vm10  ;;  %v1723_v34 = vld [vmem:[%s2714_s5 + $0x1] ss:$0 sm:$0xff] }
 0xf1e   :  { %v1198_v1 = vadd.f32 %v1896_v36, %v1197_v42  ;;  %v1227_v46 = vmul.f32 %v1900_v22, %v1226_v41 }
 0xf1f   :  { %v1213_v48 = vadd.f32 %v1898_v17, %v1212_v43  ;;  %v1242_v49 = vmul.f32 %v1902_v19, %v1241_v44 }
 0xf20   :  { %v1202_v51 = vsel %vm1201_vm7, %v1896_v36, %v1198_v1  ;;  %v1228_v53 = vadd.f32 %v1900_v22, %v1227_v46  ;;  %v1463_v36 = vld [vmem:[#allocation8 + $0x30] sm:$0xff] }
 0xf21   :  { %v1207_v10 = vsel %vm2600_vm9, %v1206_v27, %v1202_v51  ;;  %v1217_v54 = vsel %vm1216_vm15, %v1898_v17, %v1213_v48  ;;  %v1243_v56 = vadd.f32 %v1902_v19, %v1242_v49  ;;  %vm2764_vm9 = vcmask 1043459   ;;  %v1507_v17 = vld [vmem:[#allocation10 + $0x38] sm:$0xff]  ;;  %1492 = vmatpush.msra.mxu3 %v1463_v36 }
 0xf22   :  { %v1222_v57 = vsel %vm2604_vm6, %v1221_v52, %v1217_v54  ;;  %v1232_v58 = vsel %vm1231_vm5, %v1900_v22, %v1228_v53  ;;  %v1262_v61 = vrot.slane %v1207_v10, 6  ;;  %vm2765_vm13 = vmmov %vm2764_vm9  ;;  %vm2766_vm6 = vcmp.lt.s32.totalorder %v2291_v29, 96  ;;  %1523 = vmatpush.msrb.mxu1 %v1507_v17  ;;  %v1505_v22 = vld [vmem:[#allocation10 + $0x28] sm:$0xff] }
 0xf23   :  { %v1237_v62 = vsel %vm1234_vm12, %v1236_v55, %v1232_v58  ;;  %v1247_v0 = vsel %vm1246_vm4, %v1902_v19, %v1243_v56  ;;  %v1263_v63 = vrot.slane %v1222_v57, 5  ;;  %v1280_v33 = vsel %vm2765_vm13, %v1279_v12, %v1278_v7  ;;  %vm2767_vm0 = vmmov %vm2764_vm9  ;;  %1493 = vmatpush.msra.mxu3 %v1462_v21  ;;  %v1502_v55 = vld [vmem:[#allocation7 + $0x4] sm:$0xf] }
 0xf24   :  { %v1252_v4 = vsel %vm1249_vm8, %v1251_v59, %v1247_v0  ;;  %v1265_v6 = vrot.slane %v1237_v62, 4  ;;  %v1476_v15 = vsel %vm2767_vm0, %v1475_v5, %v2219_v16  ;;  %1524 = vmatpush.msrb.mxu1 %v1506_v18  ;;  %vm2770_vm12 = vmmov %vm2766_vm6 }
 0xf25   :  { %v1264_v8 = vsel %vm307_vm1, %v1263_v63, %v1262_v61  ;;  %v1267_v9 = vrot.slane %v1252_v4, 3  ;;  %1494 = vmatpush.msra.mxu3 %v1461_v23  ;;  %vm2771_vm5 = vmmov %vm2769_vm3 }
 0xf26   :  { %v1266_v13 = vsel %vm310_vm2, %v1265_v6, %v1264_v8  ;;  %1525 = vmatpush.msrb.mxu1 %v1505_v22  ;;  %1705 = vmatmul.msk.f32.vlgmr.msra.gmra.mxu3 %vm2768_vm10, %v1476_v15 }
 0xf27   :  { %v1268_v2 = vsel %vm2764_vm9, %v1267_v9, %v1266_v13 }
 0xf28   :  { %v1282_v3 = vsel %vm2766_vm6, %v1268_v2, %v1280_v33  ;;  %1526 = vmatpush.msrb.mxu1 %v1504_v24 }
 0xf29   :  { %1285 = vrot.lane.b32.xlu1 %v1282_v3, %s2130_s11  ;;  %1706 = vmatmul.msk.f32.vlgmr.msrb.gmra.mxu1 %vm2769_vm3, %v1500_v26  ;;  %v1283_v19 = vmul.f32 %v1282_v3, %v2583_v45 }
 0xf9b   :  { %v1286_v16 = vpop.permute.xlu1 %1285 }
 0xf9c   :  { %v1288_v27 = vmul.f32 %v1286_v16, %v1282_v3 }
 0xf9e   :  { %1290 = vrot.lane.b32.xlu2 %v1288_v27, %s2130_s11 }
 0xfa6   :  { %v1528_v39 = vpop.f32.mrf.mxu1 }
 0xfa9   :  { %v1496_v35 = vpop.f32.mrf.mxu3 }
 0xfaa   :  { %v1497_v38 = vadd.f32 %v1723_v34, %v1496_v35  ;;  %v1579_v34 = vld [vmem:[#allocation11 + $0x20] sm:$0xff] }
 0xfac   :  { %v1531_v42 = vadd.f32 %v1528_v39, %v1497_v38 }
 0xfae   :  { %v1707_v41 = vmul.f32 -1.442695, %v1531_v42 }
 0xff8   :  { %v1291_v28 = vpop.permute.xlu2 %1290 }
 0xff9   :  { %v2635_v30 = vadd.f32 %v1291_v28, %v1283_v19 }
 0xffb   :  { %1905 = vtanh.f32 %v2635_v30 }
 0xffc   :  { %1907 = vpow2.f32 %v1707_v41 }
0x1001   :  { %v1906_v32 = vpop.eup %1905 }
0x1002   :  { %1296 = vrot.lane.b32.xlu0 %v1906_v32, %s2130_s11  ;;  %v1908_v37 = vpop.eup %1907 }
0x1003   :  { %v1535_v45 = vadd.f32 1.0, %v1908_v37 }
0x1005   :  { %1909 = vrcp.f32 %v1535_v45  ;;  %v1547_v44 = vand.u32 2147483648, %v1535_v45  ;;  %vm1541_vm11 = vweird.f32 %v1535_v45  ;;  %v1545_v46 = vand.u32 2147483647, %v1535_v45 }
0x1006   :  { %1911 = vtanh.f32 %v1531_v42 }
0x1007   :  { %v1548_v48 = vor.u32 1.1754944e-38, %v1547_v44  ;;  %vm1546_vm15 = vcmp.eq.f32.partialorder %v1545_v46, 8.507059e+37 }
0x100b   :  { %v1910_v60 = vpop.eup %1909 }
0x100c   :  { %v1537_v43 = vmul.f32 %v1910_v60, %v1535_v45  ;;  %vm1542_vm7 = vweird.f32 %v1910_v60  ;;  %v1912_v50 = vpop.eup %1911  ;;  %v1724_v45 = vld [vmem:[%s2716_s7] ss:$0 sm:$0xff] }
0x100d   :  { %vm1543_vm14 = vmor %vm1541_vm11, %vm1542_vm7 }
0x100e   :  { %v1538_v1 = vsub.f32 1.0, %v1537_v43 }
0x1010   :  { %v1539_v47 = vmul.f32 %v1910_v60, %v1538_v1 }
0x1012   :  { %v1540_v49 = vadd.f32 %v1910_v60, %v1539_v47 }
0x1014   :  { %v1544_v51 = vsel %vm1543_vm14, %v1910_v60, %v1540_v49 }
0x1015   :  { %v1549_v52 = vsel %vm1546_vm15, %v1548_v48, %v1544_v51 }
0x1016   :  { %v2644_v53 = vsel %vm2770_vm12, %v1549_v52, %v1912_v50 }
0x1017   :  { %1559 = vrot.lane.b32.xlu0 %v2644_v53, %s2130_s11 }
0x1074   :  { %v1297_v10 = vpop.permute.xlu0 %1296 }
0x1075   :  { %v1299_v54 = vmul.f32 %v1297_v10, %v1282_v3 }
0x1077   :  { %1301 = vrot.lane.b32.xlu1 %v1299_v54, %s2121_s10 }
0x107f   :  { %1554 = vrot.lane.b32.xlu1 %v1502_v55, %s2130_s11 }
0x1089   :  { %v1560_v56 = vpop.permute.xlu0 %1559 }
0x108a   :  { %v1562_v57 = vmul.f32 %v1560_v56, %v2644_v53 }
0x108c   :  { %1564 = vrot.lane.b32.xlu0 %v1562_v57, %s2130_s11 }
0x10e9   :  { %v1302_v58 = vpop.permute.xlu1 %1301 }
0x10ea   :  { %1699 = vmatmul.msk.f32.vlgmr.msra.gmra.mxu2 %vm2771_vm5, %v1302_v58 }
0x116d   :  { %v1322_v59 = vpop.f32.mrf.mxu2 }
0x116e   :  { %v1326_v61 = vrot.slane %v1322_v59, 1  ;;  %v1327_v62 = vrot.slane %v1322_v59, 2  ;;  %v1328_v0 = vrot.slane %v1322_v59, 3  ;;  %v1329_v63 = vrot.slane %v1322_v59, 4 }
0x1170   :  { %v1334_v4 = vadd.f32 %v1326_v61, %v2247_v20  ;;  %v1335_v6 = vadd.f32 %v1327_v62, %v2250_v25  ;;  %v1336_v7 = vadd.f32 %v1328_v0, %v2253_v31  ;;  %v1337_v8 = vadd.f32 %v1329_v63, %v2258_v40 }
0x1172   :  { %v1700_v9 = vmul.f32 -1.442695, %v1334_v4  ;;  %v1701_v12 = vmul.f32 -1.442695, %v1335_v6  ;;  %v1702_v13 = vmul.f32 -1.442695, %v1336_v7  ;;  %1913 = vtanh.f32 %v1334_v4 }
0x1173   :  { %v1703_v2 = vmul.f32 -1.442695, %v1337_v8  ;;  %1915 = vtanh.f32 %v1335_v6 }
0x1174   :  { %1917 = vpow2.f32 %v1700_v9 }
0x1175   :  { %1919 = vpow2.f32 %v1701_v12 }
0x1176   :  { %1921 = vpow2.f32 %v1702_v13 }
0x1177   :  { %1923 = vpow2.f32 %v1703_v2 }
0x1178   :  { %v1914_v33 = vpop.eup %1913  ;;  %1925 = vtanh.f32 %v1336_v7 }
0x1179   :  { %v1916_v3 = vpop.eup %1915  ;;  %v1434_v15 = vrot.slane %v1914_v33, 7 }
0x117a   :  { %v1918_v14 = vpop.eup %1917  ;;  %v1435_v17 = vrot.slane %v1916_v3, 6 }
0x117b   :  { %v1920_v20 = vpop.eup %1919  ;;  %v1350_v5 = vadd.f32 1.0, %v1918_v14 }
0x117c   :  { %v1922_v25 = vpop.eup %1921  ;;  %v1351_v11 = vadd.f32 1.0, %v1920_v20  ;;  %v1436_v27 = vsel %vm307_vm1, %v1435_v17, %v1434_v15  ;;  %v1565_v15 = vpop.permute.xlu0 %1564 }
0x117d   :  { %v1924_v31 = vpop.eup %1923  ;;  %v1352_v40 = vadd.f32 1.0, %v1922_v25  ;;  %1927 = vrcp.f32 %v1350_v5  ;;  %v1363_v18 = vand.u32 2147483647, %v1350_v5  ;;  %v1365_v21 = vand.u32 2147483648, %v1350_v5 }
0x117e   :  { %v2657_v36 = vadd.f32 1.0, %v1924_v31  ;;  %1929 = vrcp.f32 %v1351_v11  ;;  %v2660_v22 = vpop.eup %1925  ;;  %v1378_v24 = vand.u32 2147483647, %v1351_v11  ;;  %vm1359_vm4 = vweird.f32 %v1350_v5 }
0x117f   :  { %1931 = vrcp.f32 %v1352_v40  ;;  %vm1374_vm8 = vweird.f32 %v1351_v11  ;;  %v1437_v32 = vrot.slane %v2660_v22, 5  ;;  %vm2664_vm9 = vcmp.eq.f32.partialorder %v1363_v18, 8.507059e+37 }
0x1180   :  { %1933 = vrcp.f32 %v2657_v36  ;;  %v1366_v35 = vor.u32 1.1754944e-38, %v1365_v21  ;;  %v1380_v42 = vand.u32 2147483648, %v1351_v11  ;;  %vm1389_vm13 = vweird.f32 %v1352_v40 }
0x1181   :  { %1935 = vtanh.f32 %v1337_v8  ;;  %vm2668_vm6 = vcmp.eq.f32.partialorder %v1378_v24, 8.507059e+37  ;;  %v1393_v60 = vand.u32 2147483647, %v1352_v40  ;;  %v1395_v46 = vand.u32 2147483648, %v1352_v40  ;;  %v1581_v24 = vld [vmem:[#allocation11 + $0x30] sm:$0xff] }
0x1182   :  { %vm1404_vm3 = vweird.f32 %v2657_v36  ;;  %v1410_v52 = vand.u32 2147483648, %v2657_v36  ;;  %v1408_v55 = vand.u32 2147483647, %v2657_v36  ;;  %v1381_v57 = vor.u32 1.1754944e-38, %v1380_v42  ;;  %v1574_v42 = vld [vmem:[#allocation11] sm:$0xff] }
0x1183   :  { %v1928_v23 = vpop.eup %1927  ;;  %vm1394_vm12 = vcmp.eq.f32.partialorder %v1393_v60, 8.507059e+37  ;;  %v1396_v62 = vor.u32 1.1754944e-38, %v1395_v46  ;;  %v1438_v33 = vsel %vm310_vm2, %v1437_v32, %v1436_v27 }
0x1184   :  { %v1930_v26 = vpop.eup %1929  ;;  %v1355_v16 = vmul.f32 %v1928_v23, %v1350_v5  ;;  %vm1360_vm0 = vweird.f32 %v1928_v23  ;;  %v1411_v6 = vor.u32 1.1754944e-38, %v1410_v52 }
0x1185   :  { %v1932_v19 = vpop.eup %1931  ;;  %v1370_v28 = vmul.f32 %v1930_v26, %v1351_v11  ;;  %vm1375_vm10 = vweird.f32 %v1930_v26  ;;  %vm1361_vm7 = vmor %vm1359_vm4, %vm1360_vm0  ;;  %vm1638_vm0 = vcmask 257024  }
0x1186   :  { %v1934_v38 = vpop.eup %1933  ;;  %v1356_v39 = vsub.f32 1.0, %v1355_v16  ;;  %v1385_v41 = vmul.f32 %v1932_v19, %v1352_v40  ;;  %vm1390_vm11 = vweird.f32 %v1932_v19  ;;  %vm1376_vm15 = vmor %vm1374_vm8, %vm1375_vm10  ;;  %vm1409_vm8 = vcmp.eq.f32.partialorder %v1408_v55, 8.507059e+37  ;;  %v1555_v40 = vpop.permute.xlu1 %1554 }
0x1187   :  { %v1371_v37 = vsub.f32 1.0, %v1370_v28  ;;  %v1400_v43 = vmul.f32 %v1934_v38, %v2657_v36  ;;  %v1936_v47 = vpop.eup %1935  ;;  %vm1405_vm14 = vweird.f32 %v1934_v38  ;;  %vm1391_vm5 = vmor %vm1389_vm13, %vm1390_vm11  ;;  %v1557_v36 = vmul.f32 %v1555_v40, %v2644_v53 }
0x1188   :  { %v1357_v44 = vmul.f32 %v1928_v23, %v1356_v39  ;;  %v1386_v1 = vsub.f32 1.0, %v1385_v41  ;;  %vm1406_vm4 = vmor %vm1404_vm3, %vm1405_vm14  ;;  %v1439_v20 = vrot.slane %v1936_v47, 4  ;;  %v1575_v39 = vld [vmem:[#allocation11 + $0x8] sm:$0xff] }
0x1189   :  { %v1372_v48 = vmul.f32 %v1930_v26, %v1371_v37  ;;  %v1401_v49 = vsub.f32 1.0, %v1400_v43  ;;  %v1567_v17 = vadd.f32 %v1565_v15, %v1557_v36 }
0x118a   :  { %v1358_v50 = vadd.f32 %v1928_v23, %v1357_v44  ;;  %v1387_v51 = vmul.f32 %v1932_v19, %v1386_v1 }
0x118b   :  { %v1373_v10 = vadd.f32 %v1930_v26, %v1372_v48  ;;  %v1402_v54 = vmul.f32 %v1934_v38, %v1401_v49  ;;  %1937 = vtanh.f32 %v1567_v17 }
0x118c   :  { %v1362_v56 = vsel %vm1361_vm7, %v1928_v23, %v1358_v50  ;;  %v1388_v58 = vadd.f32 %v1932_v19, %v1387_v51  ;;  %v1582_v23 = vld [vmem:[#allocation11 + $0x38] sm:$0xff] }
0x118d   :  { %v1367_v59 = vsel %vm2664_vm9, %v1366_v35, %v1362_v56  ;;  %v1377_v61 = vsel %vm1376_vm15, %v1930_v26, %v1373_v10  ;;  %v1403_v0 = vadd.f32 %v1934_v38, %v1402_v54  ;;  %vm2776_vm9 = vcmask 1043459   ;;  %1600 = vmatpush.msrb.mxu2 %v1582_v23  ;;  %v1577_v35 = vld [vmem:[#allocation11 + $0x18] sm:$0xff] }
0x118e   :  { %v1382_v63 = vsel %vm2668_vm6, %v1381_v57, %v1377_v61  ;;  %v1392_v4 = vsel %vm1391_vm5, %v1932_v19, %v1388_v58  ;;  %v1422_v7 = vrot.slane %v1367_v59, 7  ;;  %vm2777_vm13 = vmmov %vm2776_vm9  ;;  %vm2778_vm6 = vcmp.lt.s32.totalorder %v2291_v29, 96  ;;  %v1580_v29 = vld [vmem:[#allocation11 + $0x28] sm:$0xff]  ;;  %1625 = vmatpush.msrb.mxu3 %v1577_v35 }
0x118f   :  { %v1397_v8 = vsel %vm1394_vm12, %v1396_v62, %v1392_v4  ;;  %v1407_v9 = vsel %vm1406_vm4, %v1934_v38, %v1403_v0  ;;  %v1423_v12 = vrot.slane %v1382_v63, 6  ;;  %v1440_v11 = vsel %vm2777_vm13, %v1439_v20, %v1438_v33  ;;  %1601 = vmatpush.msrb.mxu2 %v1581_v24  ;;  %v1576_v38 = vld [vmem:[#allocation11 + $0x10] sm:$0xff] }
0x1190   :  { %v1412_v13 = vsel %vm1409_vm8, %v1411_v6, %v1407_v9  ;;  %v1425_v2 = vrot.slane %v1397_v8, 5  ;;  %1626 = vmatpush.msrb.mxu3 %v1576_v38 }
0x1191   :  { %v1424_v3 = vsel %vm307_vm1, %v1423_v12, %v1422_v7  ;;  %v1427_v14 = vrot.slane %v1412_v13, 4  ;;  %v1938_v22 = vpop.eup %1937  ;;  %1602 = vmatpush.msrb.mxu2 %v1580_v29  ;;  %vm2779_vm1 = vcmask 261120  }
0x1192   :  { %v1426_v5 = vsel %vm310_vm2, %v1425_v2, %v1424_v3  ;;  %1627 = vmatpush.msrb.mxu3 %v1575_v39  ;;  %vm2780_vm2 = vmmov %vm2779_vm1 }
0x1193   :  { %v1428_v25 = vsel %vm2776_vm9, %v1427_v14, %v1426_v5  ;;  %1603 = vmatpush.msrb.mxu2 %v1579_v34 }
0x1194   :  { %v1442_v31 = vsel %vm2778_vm6, %v1428_v25, %v1440_v11  ;;  %1628 = vmatpush.msrb.mxu3 %v1574_v42 }
0x1195   :  { %1445 = vrot.lane.b32.xlu2 %v1442_v31, %s2130_s11  ;;  %v1443_v26 = vmul.f32 %v1442_v31, %v2635_v30 }
0x11ef   :  { %v1446_v18 = vpop.permute.xlu2 %1445 }
0x11f0   :  { %v1448_v21 = vmul.f32 %v1446_v18, %v1442_v31 }
0x11f2   :  { %1450 = vrot.lane.b32.xlu2 %v1448_v21, %s2130_s11 }
0x11fa   :  { %1570 = vrot.lane.b32.xlu2 %v1938_v22, %s2130_s11 }
0x124c   :  { %v1451_v16 = vpop.permute.xlu2 %1450 }
0x124d   :  { %v1453_v27 = vadd.f32 %v1451_v16, %v1443_v26 }
0x124f   :  { %1939 = vtanh.f32 %v1453_v27 }
0x1254   :  { %v1571_v19 = vpop.permute.xlu2 %1570 }
0x1255   :  { %v1940_v28 = vpop.eup %1939  ;;  %v1573_v32 = vmul.f32 %v1571_v19, %v2644_v53 }
0x1256   :  { %1456 = vrot.lane.b32.xlu1 %v1940_v28, %s2130_s11 }
0x1257   :  { %1584 = vrot.lane.b32.xlu0 %v1573_v32, %s2121_s10 }
0x12c8   :  { %v1457_v30 = vpop.permute.xlu1 %1456 }
0x12c9   :  { %v1459_v41 = vmul.f32 %v1457_v30, %v1442_v31  ;;  %v1585_v37 = vpop.permute.xlu0 %1584 }
0x12ca   :  { %1708 = vmatmul.msk.f32.vlgmr.msrb.gmra.mxu2 %vm2779_vm1, %v1585_v37 }
0x12cb   :  { %1609 = vrot.lane.b32.xlu1 %v1459_v41, %s2121_s10 }
0x133d   :  { %v1610_v53 = vpop.permute.xlu1 %1609 }
0x133e   :  { %1709 = vmatmul.msk.f32.vlgmr.msrb.gmra.mxu3 %vm2780_vm2, %v1610_v53 }
0x134d   :  { %v1605_v60 = vpop.f32.mrf.mxu2 }
0x13c1   :  { %v1630_v43 = vpop.f32.mrf.mxu3 }
0x13c2   :  { %v1631_v44 = vadd.f32 %v1630_v43, %v1605_v60 }
0x13c4   :  { %v1637_v1 = vadd.f32 %v1724_v45, %v1631_v44 }
0x13c6   :  { %1639 = vst.msk [vmem:[#allocation13] sm:$0xf] %vm1638_vm0, %v1637_v1 }
0x13c7   :  { %1650 = dma.vmem_to_hbm [thread:$0]  %s1646_s1, 64, %s1648_s21, [#allocation4]  }
0x13c8   :  { %2118 = dma.done.wait [#allocation4], 64  }
0x13c9   :  { %2119 = vsyncadd [#allocation4], 4294967232 }
0x13ca   :  { %1655 = vsyncpa [#allocation3], 1 }
0x13cb   :  { %1656 = vsyncpa [#allocation6], 1 }
0x13cc   :  { %1657 = vsyncpa [#allocation9], 1 }
0x13cd   :  { %1658 = vsyncpa [#allocation12], 1 }
0x13ce   :  { %1659 = vsyncpa [#allocation4], 1 }

</bundles_post_ra>
